<compile_context>
chip_gen: v5e
topology: v5e:2x2
jax: 0.10.0
libtpu: 0.0.40
codegen_flags: <defaults>
</compile_context>

<pallas_src>
import functools

import jax
import jax.numpy as jnp
from jax.experimental import pallas as pl
from jax.experimental.pallas import tpu as pltpu


def _bn_kernel(x_ref, gamma_ref, beta_ref, o_ref, *, eps):
    # x_ref/o_ref: (N, Cblk, HW); gamma_ref/beta_ref: (Cblk, 1) f32.
    n, c_blk, hw = x_ref.shape
    inv_cnt = jnp.float32(1.0 / (n * hw))

    # One-pass per-channel statistics (reduce over batch + spatial lanes).
    # Each read of x_ref is consumed immediately so the full tile is never kept
    # live across the rsqrt (re-reading VMEM is far cheaper than spilling).
    sum_x = jnp.sum(x_ref[...].astype(jnp.float32), axis=(0, 2), keepdims=True)   # (1,Cblk,1)
    xs = x_ref[...].astype(jnp.float32)
    sum_x2 = jnp.sum(xs * xs, axis=(0, 2), keepdims=True)                          # (1,Cblk,1)

    mean = sum_x * inv_cnt
    var = sum_x2 * inv_cnt - mean * mean                  # biased variance
    var = jnp.maximum(var, jnp.float32(0.0))              # guard one-pass cancellation
    inv_std = jax.lax.rsqrt(var + jnp.float32(eps))       # (1, Cblk, 1)

    scale = gamma_ref[...] * inv_std                      # (Cblk,1)x(1,Cblk,1)->(1,Cblk,1)
    shift = beta_ref[...] - mean * scale                  # (1, Cblk, 1)

    # Folded normalize + affine epilogue: re-read the tile from VMEM.
    o_ref[...] = (x_ref[...].astype(jnp.float32) * scale + shift).astype(o_ref.dtype)


def batchnorm2d_pallas(x_nchw, gamma, beta, eps=1e-5):
    """BatchNorm2d forward with batch statistics, computed in native NCHW layout.

    x_nchw: (N, C, H, W) float32 or bfloat16
    gamma, beta: (C,)
    returns: (N, C, H, W) in x_nchw.dtype
    """
    n, c, h, w = x_nchw.shape
    hw = h * w
    # Zero-cost reshape of the contiguous NCHW buffer; no transposes, no dtype copy.
    x3d = x_nchw.reshape(n, c, hw)
    gamma2d = gamma.reshape(c, 1).astype(jnp.float32)
    beta2d = beta.reshape(c, 1).astype(jnp.float32)

    # Always two channel blocks when legal: per-channel stats need no cross-block
    # reduction, v7x gets one block per TensorCore, v5e/v6e get 2-step pipelining.
    n_blk = 2 if (c % 2 == 0 and (c // 2) % 8 == 0) else 1
    c_blk = c // n_blk

    itemsize = jnp.dtype(x_nchw.dtype).itemsize
    cost = pl.CostEstimate(
        flops=5 * n * c * hw,
        transcendentals=c,
        bytes_accessed=2 * n * c * hw * itemsize + 2 * c * 4,
    )

    kernel = functools.partial(_bn_kernel, eps=float(eps))

    out3d = pl.pallas_call(
        kernel,
        out_shape=jax.ShapeDtypeStruct((n, c, hw), x_nchw.dtype),
        grid=(n_blk,),
        in_specs=[
            pl.BlockSpec((n, c_blk, hw), lambda i: (0, i, 0)),
            pl.BlockSpec((c_blk, 1), lambda i: (i, 0)),
            pl.BlockSpec((c_blk, 1), lambda i: (i, 0)),
        ],
        out_specs=pl.BlockSpec((n, c_blk, hw), lambda i: (0, i, 0)),
        compiler_params=pltpu.CompilerParams(
            dimension_semantics=("parallel",)),
        cost_estimate=cost,
    )(x3d, gamma2d, beta2d)

    return out3d.reshape(n, c, h, w)


def batchnorm2d_ref(x_nchw, gamma, beta, eps=1e-5):
    x = x_nchw.astype(jnp.float32)
    mean = jnp.mean(x, axis=(0, 2, 3), keepdims=True)
    var = jnp.mean((x - mean) ** 2, axis=(0, 2, 3), keepdims=True)
    x_hat = (x - mean) / jnp.sqrt(var + eps)
    return x_hat * gamma.reshape(1, -1, 1, 1) + beta.reshape(1, -1, 1, 1)


if __name__ == "__main__":
    key = jax.random.PRNGKey(0)
    k_x, k_g, k_b = jax.random.split(key, 3)

    # Shapes implied by the module: C fixed at 384 by BatchNorm2d(384);
    # keep the small spatial extent (1, 384, 14, 14).
    N, C, H, W = 1, 384, 14, 14
    x = jax.random.normal(k_x, (N, C, H, W), dtype=jnp.float32)

    # PyTorch default is ones/zeros; perturb slightly so the affine path is exercised.
    gamma = 1.0 + 0.1 * jax.random.normal(k_g, (C,), dtype=jnp.float32)
    beta = 0.1 * jax.random.normal(k_b, (C,), dtype=jnp.float32)

    out = batchnorm2d_pallas(x, gamma, beta, eps=1e-5)
    out = jax.block_until_ready(out)

    ref = batchnorm2d_ref(x, gamma, beta, eps=1e-5)
    assert out.shape == (N, C, H, W)
    assert jnp.max(jnp.abs(out - ref)) < 1e-4, "mismatch vs reference"

    print("KERNEL_OK")
</pallas_src>

<mosaic_0001>
module attributes {stable_mosaic.version = 11 : i64} {
  func.func @_bn_kernel(%arg0: i32, %arg1: memref<1x192x196xf32, #tpu.memory_space<vmem>>, %arg2: memref<192x1xf32, #tpu.memory_space<vmem>>, %arg3: memref<192x1xf32, #tpu.memory_space<vmem>>, %arg4: memref<1x192x196xf32, #tpu.memory_space<vmem>>) attributes {dimension_semantics = [#tpu.dimension_semantics<parallel>], iteration_bounds = array<i64: 2>, scalar_prefetch = 0 : i64, scratch_operands = 0 : i64, tpu.core_type = #tpu.core_type<tc>, window_params = [{transform_indices = @transform_0, window_bounds = array<i64: 1, 192, 196>}, {transform_indices = @transform_1, window_bounds = array<i64: 192, 1>}, {transform_indices = @transform_2, window_bounds = array<i64: 192, 1>}, {transform_indices = @transform_3, window_bounds = array<i64: 1, 192, 196>}]} {
    %c0 = arith.constant 0 : index
    %c0_0 = arith.constant 0 : index
    %c0_1 = arith.constant 0 : index
    %0 = vector.load %arg1[%c0, %c0_0, %c0_1] : memref<1x192x196xf32, #tpu.memory_space<vmem>>, vector<1x192x196xf32>
    %cst = arith.constant dense<0.000000e+00> : vector<192xf32>
    %1 = vector.multi_reduction <add>, %0, %cst [0, 2] : vector<1x192x196xf32> to vector<192xf32>
    %2 = vector.shape_cast %1 : vector<192xf32> to vector<1x192x1xf32>
    %c0_2 = arith.constant 0 : index
    %c0_3 = arith.constant 0 : index
    %c0_4 = arith.constant 0 : index
    %3 = vector.load %arg1[%c0_2, %c0_3, %c0_4] : memref<1x192x196xf32, #tpu.memory_space<vmem>>, vector<1x192x196xf32>
    %4 = arith.mulf %3, %3 : vector<1x192x196xf32>
    %cst_5 = arith.constant dense<0.000000e+00> : vector<192xf32>
    %5 = vector.multi_reduction <add>, %4, %cst_5 [0, 2] : vector<1x192x196xf32> to vector<192xf32>
    %6 = vector.shape_cast %5 : vector<192xf32> to vector<1x192x1xf32>
    %cst_6 = arith.constant 0.00510204071 : f32
    %7 = vector.broadcast %cst_6 : f32 to vector<1x192x1xf32>
    %8 = arith.mulf %2, %7 : vector<1x192x1xf32>
    %cst_7 = arith.constant 0.00510204071 : f32
    %9 = vector.broadcast %cst_7 : f32 to vector<1x192x1xf32>
    %10 = arith.mulf %6, %9 : vector<1x192x1xf32>
    %11 = arith.mulf %8, %8 : vector<1x192x1xf32>
    %12 = arith.subf %10, %11 : vector<1x192x1xf32>
    %cst_8 = arith.constant 0.000000e+00 : f32
    %13 = vector.broadcast %cst_8 : f32 to vector<1x192x1xf32>
    %14 = arith.maximumf %12, %13 : vector<1x192x1xf32>
    %cst_9 = arith.constant 9.99999974E-6 : f32
    %15 = vector.broadcast %cst_9 : f32 to vector<1x192x1xf32>
    %16 = arith.addf %14, %15 : vector<1x192x1xf32>
    %17 = math.rsqrt %16 : vector<1x192x1xf32>
    %c0_10 = arith.constant 0 : index
    %c0_11 = arith.constant 0 : index
    %18 = vector.load %arg2[%c0_10, %c0_11] : memref<192x1xf32, #tpu.memory_space<vmem>>, vector<192x1xf32>
    %19 = vector.shape_cast %18 : vector<192x1xf32> to vector<1x192x1xf32>
    %20 = arith.mulf %19, %17 : vector<1x192x1xf32>
    %c0_12 = arith.constant 0 : index
    %c0_13 = arith.constant 0 : index
    %21 = vector.load %arg3[%c0_12, %c0_13] : memref<192x1xf32, #tpu.memory_space<vmem>>, vector<192x1xf32>
    %22 = arith.mulf %8, %20 : vector<1x192x1xf32>
    %23 = vector.shape_cast %21 : vector<192x1xf32> to vector<1x192x1xf32>
    %24 = arith.subf %23, %22 : vector<1x192x1xf32>
    %c0_14 = arith.constant 0 : index
    %c0_15 = arith.constant 0 : index
    %c0_16 = arith.constant 0 : index
    %25 = vector.load %arg1[%c0_14, %c0_15, %c0_16] : memref<1x192x196xf32, #tpu.memory_space<vmem>>, vector<1x192x196xf32>
    %26 = vector.broadcast %20 : vector<1x192x1xf32> to vector<1x192x196xf32>
    %27 = arith.mulf %25, %26 : vector<1x192x196xf32>
    %28 = vector.broadcast %24 : vector<1x192x1xf32> to vector<1x192x196xf32>
    %29 = arith.addf %27, %28 : vector<1x192x196xf32>
    %c0_17 = arith.constant 0 : index
    %c0_18 = arith.constant 0 : index
    %c0_19 = arith.constant 0 : index
    %30 = vector.load %arg4[%c0_17, %c0_18, %c0_19] : memref<1x192x196xf32, #tpu.memory_space<vmem>>, vector<1x192x196xf32>
    tpu.vector_store %arg4[%c0_17, %c0_18, %c0_19], %29 {strides = array<i32>} : memref<1x192x196xf32, #tpu.memory_space<vmem>>, vector<1x192x196xf32>,
    return
  }
  func.func @transform_0(%arg0: i32) -> (i32, i32, i32) {
    %c0_i32 = arith.constant 0 : i32
    %c0_i32_0 = arith.constant 0 : i32
    %c0_i32_1 = arith.constant 0 : i32
    return %c0_i32, %arg0, %c0_i32_0 : i32, i32, i32
  }
  func.func @transform_1(%arg0: i32) -> (i32, i32) {
    %c0_i32 = arith.constant 0 : i32
    %c0_i32_0 = arith.constant 0 : i32
    return %arg0, %c0_i32 : i32, i32
  }
  func.func @transform_2(%arg0: i32) -> (i32, i32) {
    %c0_i32 = arith.constant 0 : i32
    %c0_i32_0 = arith.constant 0 : i32
    return %arg0, %c0_i32 : i32, i32
  }
  func.func @transform_3(%arg0: i32) -> (i32, i32, i32) {
    %c0_i32 = arith.constant 0 : i32
    %c0_i32_0 = arith.constant 0 : i32
    %c0_i32_1 = arith.constant 0 : i32
    return %c0_i32, %arg0, %c0_i32_0 : i32, i32, i32
  }
}

</mosaic_0001>

<bundles_post_ra>
// kernel: tpu_custom_call.1
= control target key start
LH: loop header
LB: loop body
LE: loop exit
PB: predicated region body
PF: predicated region fallthrough
CT: control target
= control target key end

     0   :  { %s1634_s12 = smov 0   ;;  %s2928_s0 = inlined_call_operand.vmem [shape: f32[1,384,196], index: 0, kind: input, shape index: {}]   ;;  %s2929_s1 = inlined_call_operand.vmem [shape: f32[384,1], index: 1, kind: input, shape index: {}]   ;;  %s2930_s2 = inlined_call_operand.vmem [shape: f32[384,1], index: 2, kind: input, shape index: {}]   ;;  %s2931_s3 = inlined_call_operand.vmem [shape: f32[1,384,196], index: 3, kind: output, shape index: {}]  }
   0x1 LB: > { %s1482_s13 = sadd.s32 4294967295, %s1611_s12   ;;  %p1486_p0 = scmp.ge.s32.totalorder %s1611_s12, 1  ;;  %s1611_s12 = sphi %s1634_s12, %s13_s12  }
   0x2   : > { %p161_p1 = scmp.lt.s32.totalorder %s1611_s12, 3 }
   0x4   : > { %p162_p2 = pnand %p1486_p0, %p161_p1 }
   0x6   : > { %165 = sbr.rel (%p162_p2) target bundleno = 489 (0x1e9), region = 32 }
   0xb   : > { %s197_s14 = smul.u32 24, %s1482_s13  ;;  %vm271_vm0 = vcmask 556032  }
   0xd   : > { %p198_p3 = scmp.lt.s32.totalorder %s197_s14, 47 }
   0xf   : > { %s2988_s14 = smov (!%p198_p3, %s197_s14), 47 }
  0x10   : > { %s1495_s15 = sshll.u32 %s2988_s14, 4  ;;  %s1489_s19 = sshll.u32 %s2988_s14, 3 }
  0x11   : > { %s1650_s18 = scalar_lea.vmem %s2928_s0, %s1495_s15  ;;  %s2176_s22 = scalar_lea.vmem %s2929_s1, %s1489_s19 }
  0x12   : > { %v1653_v0 = vld [vmem:[%s1650_s18 + $0x40] sm:$0xff]  ;;  %v1656_v1 = vld [vmem:[%s1650_s18 + $0x48] sm:$0xff]  ;;  %v1678_v10 = vld [vmem:[%s1650_s18 + $0x58] sm:$0xff]  ;;  %s2628_s25 = scalar_lea.vmem %s2930_s2, %s1489_s19  ;;  %s2759_s28 = scalar_lea.vmem %s2931_s3, %s1495_s15 }
  0x13   : > { %v1659_v2 = vld [vmem:[%s1650_s18 + $0x20] sm:$0xff]  ;;  %v288_v3 = vsel %vm271_vm0, %v1656_v1, 0.0  ;;  %v1664_v4 = vld [vmem:[%s1650_s18 + $0x28] sm:$0xff]  ;;  %v1683_v13 = vld [vmem:[%s1650_s18 + $0x38] sm:$0xff]  ;;  %v292_v16 = vsel %vm271_vm0, %v1678_v10, 0.0 }
  0x14   : > { %v1667_v5 = vld [vmem:[%s1650_s18] sm:$0xff]  ;;  %v1670_v6 = vld [vmem:[%s1650_s18 + $0x8] sm:$0xff]  ;;  %v289_v7 = vadd.f32 %v288_v3, %v1653_v0  ;;  %v280_v8 = vsel %vm271_vm0, %v1664_v4, 0.0  ;;  %v1686_v14 = vld [vmem:[%s1650_s18 + $0x18] sm:$0xff]  ;;  %v284_v18 = vsel %vm271_vm0, %v1683_v13, 0.0 }
  0x15   : > { %v272_v9 = vsel %vm271_vm0, %v1670_v6, 0.0  ;;  %v281_v11 = vadd.f32 %v280_v8, %v1659_v2  ;;  %v1689_v15 = vld [vmem:[%s1650_s18 + $0x50] sm:$0xff]  ;;  %v276_v20 = vsel %vm271_vm0, %v1686_v14, 0.0  ;;  %v1707_v24 = vld [vmem:[%s1650_s18 + $0x88] sm:$0xff]  ;;  %v1710_v25 = vld [vmem:[%s1650_s18 + $0x78] sm:$0xff] }
  0x16   : > { %v273_v12 = vadd.f32 %v272_v9, %v1667_v5  ;;  %290 = vadd.xlane.f32.xlu2 %v289_v7  ;;  %v1694_v17 = vld [vmem:[%s1650_s18 + $0x30] sm:$0xff]  ;;  %v293_v21 = vadd.f32 %v292_v16, %v1689_v15  ;;  %v1713_v26 = vld [vmem:[%s1650_s18 + $0x68] sm:$0xff]  ;;  %v1716_v27 = vld [vmem:[%s1650_s18 + $0x80] sm:$0xff]  ;;  %v304_v28 = vsel %vm271_vm0, %v1707_v24, 0.0  ;;  %v300_v30 = vsel %vm271_vm0, %v1710_v25, 0.0 }
  0x17   : > { %282 = vadd.xlane.f32.xlu1 %v281_v11  ;;  %v1699_v19 = vld [vmem:[%s1650_s18 + $0x10] sm:$0xff]  ;;  %v285_v22 = vadd.f32 %v284_v18, %v1694_v17  ;;  %v1726_v31 = vld [vmem:[%s1650_s18 + $0x60] sm:$0xff]  ;;  %v296_v32 = vsel %vm271_vm0, %v1713_v26, 0.0  ;;  %v305_v33 = vadd.f32 %v304_v28, %v1716_v27  ;;  %v1734_v36 = vld [vmem:[%s1650_s18 + $0xb8] sm:$0xff] }
  0x18   : > { %274 = vadd.xlane.f32.xlu0 %v273_v12  ;;  %v277_v23 = vadd.f32 %v276_v20, %v1699_v19  ;;  %v1721_v29 = vld [vmem:[%s1650_s18 + $0x70] sm:$0xff]  ;;  %v297_v35 = vadd.f32 %v296_v32, %v1726_v31  ;;  %v1737_v37 = vld [vmem:[%s1650_s18 + $0xa8] sm:$0xff]  ;;  %v1740_v38 = vld [vmem:[%s1650_s18 + $0x98] sm:$0xff]  ;;  %v316_v40 = vsel %vm271_vm0, %v1734_v36, 0.0 }
  0x19   : > { %v301_v34 = vadd.f32 %v300_v30, %v1721_v29  ;;  %v1743_v39 = vld [vmem:[%s1650_s18 + $0xb0] sm:$0xff]  ;;  %v1748_v41 = vld [vmem:[%s1650_s18 + $0xa0] sm:$0xff]  ;;  %v312_v42 = vsel %vm271_vm0, %v1737_v37, 0.0  ;;  %v308_v44 = vsel %vm271_vm0, %v1740_v38, 0.0  ;;  %v1761_v48 = vld [vmem:[%s1650_s18 + $0xe8] sm:$0xff] }
  0x1a   : > { %v1753_v43 = vld [vmem:[%s1650_s18 + $0x90] sm:$0xff]  ;;  %v317_v45 = vadd.f32 %v316_v40, %v1743_v39  ;;  %v313_v46 = vadd.f32 %v312_v42, %v1748_v41  ;;  %v1764_v49 = vld [vmem:[%s1650_s18 + $0xd8] sm:$0xff]  ;;  %v1767_v50 = vld [vmem:[%s1650_s18 + $0xc8] sm:$0xff]  ;;  %v328_v52 = vsel %vm271_vm0, %v1761_v48, 0.0 }
  0x1b   : > { %v309_v47 = vadd.f32 %v308_v44, %v1753_v43  ;;  %v1770_v51 = vld [vmem:[%s1650_s18 + $0xe0] sm:$0xff]  ;;  %v1775_v53 = vld [vmem:[%s1650_s18 + $0xd0] sm:$0xff]  ;;  %v324_v54 = vsel %vm271_vm0, %v1764_v49, 0.0  ;;  %v320_v56 = vsel %vm271_vm0, %v1767_v50, 0.0  ;;  %v1788_v60 = vld [vmem:[%s1650_s18 + $0x118] sm:$0xff] }
  0x1c   : > { %v1780_v55 = vld [vmem:[%s1650_s18 + $0xc0] sm:$0xff]  ;;  %v329_v57 = vadd.f32 %v328_v52, %v1770_v51  ;;  %v325_v58 = vadd.f32 %v324_v54, %v1775_v53  ;;  %v1791_v61 = vld [vmem:[%s1650_s18 + $0x108] sm:$0xff]  ;;  %v1794_v62 = vld [vmem:[%s1650_s18 + $0xf8] sm:$0xff]  ;;  %v340_v3 = vsel %vm271_vm0, %v1788_v60, 0.0 }
  0x1d   : > { %v321_v59 = vadd.f32 %v320_v56, %v1780_v55  ;;  %v1797_v63 = vld [vmem:[%s1650_s18 + $0x110] sm:$0xff]  ;;  %v1802_v7 = vld [vmem:[%s1650_s18 + $0x100] sm:$0xff]  ;;  %v336_v8 = vsel %vm271_vm0, %v1791_v61, 0.0  ;;  %v332_v11 = vsel %vm271_vm0, %v1794_v62, 0.0  ;;  %v1815_v20 = vld [vmem:[%s1650_s18 + $0x148] sm:$0xff] }
  0x1e   : > { %294 = vadd.xlane.f32.xlu2 %v293_v21  ;;  %v1807_v9 = vld [vmem:[%s1650_s18 + $0xf0] sm:$0xff]  ;;  %v341_v12 = vadd.f32 %v340_v3, %v1797_v63  ;;  %v337_v16 = vadd.f32 %v336_v8, %v1802_v7  ;;  %v1818_v21 = vld [vmem:[%s1650_s18 + $0x138] sm:$0xff]  ;;  %v352_v28 = vsel %vm271_vm0, %v1815_v20, 0.0  ;;  %v1856_v54 = vld [vmem:[%s1650_s18 + $0x160] sm:$0xff] }
  0x1f   : > { %286 = vadd.xlane.f32.xlu1 %v285_v22  ;;  %v333_v18 = vadd.f32 %v332_v11, %v1807_v9  ;;  %v1821_v22 = vld [vmem:[%s1650_s18 + $0x128] sm:$0xff]  ;;  %v1829_v30 = vld [vmem:[%s1650_s18 + $0x130] sm:$0xff]  ;;  %v348_v32 = vsel %vm271_vm0, %v1818_v21, 0.0  ;;  %v1842_v44 = vld [vmem:[%s1650_s18 + $0x178] sm:$0xff]  ;;  %v373_v11 = vmul.f32 %v1664_v4, %v1664_v4  ;;  %v368_v4 = vmul.f32 %v1667_v5, %v1667_v5 }
  0x20   : > { %278 = vadd.xlane.f32.xlu0 %v277_v23  ;;  %v1824_v23 = vld [vmem:[%s1650_s18 + $0x140] sm:$0xff]  ;;  %v349_v40 = vadd.f32 %v348_v32, %v1829_v30  ;;  %v364_v52 = vsel %vm271_vm0, %v1842_v44, 0.0  ;;  %v370_v32 = vmul.f32 %v1699_v19, %v1699_v19  ;;  %v378_v5 = vmul.f32 %v1689_v15, %v1689_v15 }
  0x21   : > { %v385_v15 = vmul.f32 %v1707_v24, %v1707_v24  ;;  %v380_v24 = vmul.f32 %v1726_v31, %v1726_v31 }
  0x26   : > { %306 = vadd.xlane.f32.xlu2 %v305_v33  ;;  %v1834_v33 = vld [vmem:[%s1650_s18 + $0x120] sm:$0xff] }
  0x27   : > { %302 = vadd.xlane.f32.xlu1 %v301_v34  ;;  %v344_v34 = vsel %vm271_vm0, %v1821_v22, 0.0 }
  0x28   : > { %298 = vadd.xlane.f32.xlu0 %v297_v35  ;;  %v353_v35 = vadd.f32 %v352_v28, %v1824_v23  ;;  %v345_v42 = vadd.f32 %v344_v34, %v1834_v33  ;;  %v424_v28 = vsel %vm271_vm0, %v373_v11, 0.0  ;;  %v381_v11 = vmul.f32 %v1713_v26, %v1713_v26 }
  0x2e   : > { %318 = vadd.xlane.f32.xlu2 %v317_v45  ;;  %v1845_v45 = vld [vmem:[%s1650_s18 + $0x168] sm:$0xff] }
  0x2f   : > { %314 = vadd.xlane.f32.xlu1 %v313_v46  ;;  %v1848_v46 = vld [vmem:[%s1650_s18 + $0x158] sm:$0xff]  ;;  %v360_v56 = vsel %vm271_vm0, %v1845_v45, 0.0 }
  0x30   : > { %310 = vadd.xlane.f32.xlu0 %v309_v47  ;;  %v1851_v47 = vld [vmem:[%s1650_s18 + $0x170] sm:$0xff]  ;;  %v361_v3 = vadd.f32 %v360_v56, %v1856_v54  ;;  %v376_v56 = vmul.f32 %v1653_v0, %v1653_v0  ;;  %v384_v0 = vmul.f32 %v1716_v27, %v1716_v27  ;;  %v391_v27 = vmul.f32 %v1734_v36, %v1734_v36 }
  0x31   : > { %v386_v36 = vmul.f32 %v1753_v43, %v1753_v43 }
  0x32   : > { %v460_v31 = vsel %vm271_vm0, %v391_v27, 0.0 }
  0x36   : > { %330 = vadd.xlane.f32.xlu2 %v329_v57  ;;  %v1861_v57 = vld [vmem:[%s1650_s18 + $0x150] sm:$0xff] }
  0x37   : > { %326 = vadd.xlane.f32.xlu1 %v325_v58  ;;  %v356_v58 = vsel %vm271_vm0, %v1848_v46, 0.0 }
  0x38   : > { %322 = vadd.xlane.f32.xlu0 %v321_v59  ;;  %v365_v59 = vadd.f32 %v364_v52, %v1851_v47  ;;  %v357_v8 = vadd.f32 %v356_v58, %v1861_v57  ;;  %v375_v52 = vmul.f32 %v1683_v13, %v1683_v13 }
  0x3e   : > { %342 = vadd.xlane.f32.xlu2 %v341_v12  ;;  %v371_v12 = vmul.f32 %v1686_v14, %v1686_v14 }
  0x3f   : > { %338 = vadd.xlane.f32.xlu1 %v337_v16  ;;  %v369_v16 = vmul.f32 %v1670_v6, %v1670_v6 }
  0x40   : > { %334 = vadd.xlane.f32.xlu0 %v333_v18  ;;  %v372_v18 = vmul.f32 %v1659_v2, %v1659_v2  ;;  %v420_v34 = vsel %vm271_vm0, %v371_v12, 0.0  ;;  %v379_v2 = vmul.f32 %v1678_v10, %v1678_v10  ;;  %v374_v10 = vmul.f32 %v1694_v17, %v1694_v17 }
  0x41   : > { %v416_v14 = vsel %vm271_vm0, %v369_v16, 0.0  ;;  %v421_v6 = vadd.f32 %v420_v34, %v370_v32  ;;  %v448_v17 = vsel %vm271_vm0, %v385_v15, 0.0  ;;  %v382_v12 = vmul.f32 %v1721_v29, %v1721_v29 }
  0x42   : > { %v436_v19 = vsel %vm271_vm0, %v379_v2, 0.0  ;;  %v389_v32 = vmul.f32 %v1737_v37, %v1737_v37  ;;  %v390_v29 = vmul.f32 %v1743_v39, %v1743_v39  ;;  %v388_v34 = vmul.f32 %v1748_v41, %v1748_v41 }
  0x43   : > { %v397_v39 = vmul.f32 %v1761_v48, %v1761_v48  ;;  %v393_v2 = vmul.f32 %v1767_v50, %v1767_v50  ;;  %v396_v41 = vmul.f32 %v1770_v51, %v1770_v51  ;;  %v392_v48 = vmul.f32 %v1780_v55, %v1780_v55 }
  0x44   : > { %v403_v51 = vmul.f32 %v1788_v60, %v1788_v60  ;;  %v398_v60 = vmul.f32 %v1807_v9, %v1807_v9  ;;  %v405_v15 = vmul.f32 %v1821_v22, %v1821_v22 }
  0x45   : > { %v472_v43 = vsel %vm271_vm0, %v397_v39, 0.0 }
  0x46   : > { %354 = vadd.xlane.f32.xlu2 %v353_v35  ;;  %v425_v35 = vadd.f32 %v424_v28, %v372_v18  ;;  %v449_v18 = vadd.f32 %v448_v17, %v384_v0  ;;  %v484_v55 = vsel %vm271_vm0, %v403_v51, 0.0 }
  0x47   : > { %350 = vadd.xlane.f32.xlu1 %v349_v40  ;;  %v417_v40 = vadd.f32 %v416_v14, %v368_v4  ;;  %v387_v4 = vmul.f32 %v1740_v38, %v1740_v38  ;;  %v456_v14 = vsel %vm271_vm0, %v389_v32, 0.0 }
  0x48   : > { %346 = vadd.xlane.f32.xlu0 %v345_v42  ;;  %v377_v42 = vmul.f32 %v1656_v1, %v1656_v1  ;;  %v428_v1 = vsel %vm271_vm0, %v375_v52, 0.0  ;;  %v457_v38 = vadd.f32 %v456_v14, %v388_v34 }
  0x49   : > { %v452_v37 = vsel %vm271_vm0, %v387_v4, 0.0 }
  0x4a   : > { %v432_v58 = vsel %vm271_vm0, %v377_v42, 0.0  ;;  %v394_v42 = vmul.f32 %v1775_v53, %v1775_v53  ;;  %v402_v53 = vmul.f32 %v1797_v63, %v1797_v63  ;;  %v409_v63 = vmul.f32 %v1815_v20, %v1815_v20 }
  0x4b   : > { %v433_v13 = vadd.f32 %v432_v58, %v376_v56  ;;  %v401_v56 = vmul.f32 %v1791_v61, %v1791_v61  ;;  %v400_v58 = vmul.f32 %v1802_v7, %v1802_v7  ;;  %v408_v7 = vmul.f32 %v1824_v23, %v1824_v23 }
  0x4c   : > { %v496_v9 = vsel %vm271_vm0, %v409_v63, 0.0  ;;  %v404_v20 = vmul.f32 %v1834_v33, %v1834_v33  ;;  %v415_v23 = vmul.f32 %v1842_v44, %v1842_v44  ;;  %v410_v44 = vmul.f32 %v1861_v57, %v1861_v57 }
  0x4d   : > { %v497_v0 = vadd.f32 %v496_v9, %v408_v7 }
  0x4e   : > { %366 = vadd.xlane.f32.xlu2 %v365_v59  ;;  %v437_v59 = vadd.f32 %v436_v19, %v378_v5  ;;  %v473_v5 = vadd.f32 %v472_v43, %v396_v41  ;;  %v508_v33 = vsel %vm271_vm0, %v415_v23, 0.0 }
  0x4f   : > { %362 = vadd.xlane.f32.xlu1 %v361_v3  ;;  %v429_v3 = vadd.f32 %v428_v1, %v374_v10  ;;  %v399_v10 = vmul.f32 %v1794_v62, %v1794_v62  ;;  %v480_v1 = vsel %vm271_vm0, %v401_v56, 0.0 }
  0x50   : > { %358 = vadd.xlane.f32.xlu0 %v357_v8  ;;  %v383_v8 = vmul.f32 %v1710_v25, %v1710_v25  ;;  %v440_v25 = vsel %vm271_vm0, %v381_v11, 0.0  ;;  %v481_v62 = vadd.f32 %v480_v1, %v400_v58 }
  0x51   : > { %v441_v28 = vadd.f32 %v440_v25, %v380_v24  ;;  %v476_v61 = vsel %vm271_vm0, %v399_v10, 0.0  ;;  %v411_v24 = vmul.f32 %v1848_v46, %v1848_v46 }
  0x52   : > { %v444_v16 = vsel %vm271_vm0, %v383_v8, 0.0  ;;  %v406_v8 = vmul.f32 %v1829_v30, %v1829_v30  ;;  %v414_v30 = vmul.f32 %v1851_v47, %v1851_v47 }
  0x53   : > { %v445_v26 = vadd.f32 %v444_v16, %v382_v12  ;;  %v413_v12 = vmul.f32 %v1845_v45, %v1845_v45  ;;  %v412_v16 = vmul.f32 %v1856_v54, %v1856_v54  ;;  %v500_v45 = vsel %vm271_vm0, %v411_v24, 0.0 }
  0x54   : > { %v501_v47 = vadd.f32 %v500_v45, %v410_v44 }
  0x55   : > { %v504_v25 = vsel %vm271_vm0, %v413_v12, 0.0 }
  0x56   : > { %426 = vadd.xlane.f32.xlu2 %v425_v35  ;;  %v461_v35 = vadd.f32 %v460_v31, %v390_v29  ;;  %v505_v27 = vadd.f32 %v504_v25, %v412_v16 }
  0x57   : > { %422 = vadd.xlane.f32.xlu1 %v421_v6  ;;  %v453_v6 = vadd.f32 %v452_v37, %v386_v36 }
  0x58   : > { %418 = vadd.xlane.f32.xlu0 %v417_v40  ;;  %v395_v40 = vmul.f32 %v1764_v49, %v1764_v49  ;;  %v464_v49 = vsel %vm271_vm0, %v393_v2, 0.0 }
  0x59   : > { %v465_v19 = vadd.f32 %v464_v49, %v392_v48 }
  0x5a   : > { %v468_v52 = vsel %vm271_vm0, %v395_v40, 0.0 }
  0x5b   : > { %v469_v50 = vadd.f32 %v468_v52, %v394_v42 }
  0x5e   : > { %438 = vadd.xlane.f32.xlu2 %v437_v59  ;;  %v485_v59 = vadd.f32 %v484_v55, %v402_v53 }
  0x5f   : > { %434 = vadd.xlane.f32.xlu1 %v433_v13  ;;  %v477_v13 = vadd.f32 %v476_v61, %v398_v60 }
  0x60   : > { %430 = vadd.xlane.f32.xlu0 %v429_v3  ;;  %v407_v3 = vmul.f32 %v1818_v21, %v1818_v21  ;;  %v488_v21 = vsel %vm271_vm0, %v405_v15, 0.0 }
  0x61   : > { %v489_v17 = vadd.f32 %v488_v21, %v404_v20 }
  0x62   : > { %v492_v11 = vsel %vm271_vm0, %v407_v3, 0.0 }
  0x63   : > { %v493_v22 = vadd.f32 %v492_v11, %v406_v8 }
  0x66   : > { %450 = vadd.xlane.f32.xlu2 %v449_v18 }
  0x67   : > { %446 = vadd.xlane.f32.xlu1 %v445_v26 }
  0x68   : > { %442 = vadd.xlane.f32.xlu0 %v441_v28  ;;  %v509_v28 = vadd.f32 %v508_v33, %v414_v30 }
  0x6e   : > { %462 = vadd.xlane.f32.xlu2 %v461_v35 }
  0x6f   : > { %458 = vadd.xlane.f32.xlu1 %v457_v38 }
  0x70   : > { %454 = vadd.xlane.f32.xlu0 %v453_v6 }
  0x76   : > { %474 = vadd.xlane.f32.xlu2 %v473_v5 }
  0x77   : > { %470 = vadd.xlane.f32.xlu1 %v469_v50 }
  0x78   : > { %466 = vadd.xlane.f32.xlu0 %v465_v19 }
  0x7e   : > { %486 = vadd.xlane.f32.xlu2 %v485_v59  ;;  %v1613_v59 = vmov 0  }
  0x7f   : > { %482 = vadd.xlane.f32.xlu1 %v481_v62  ;;  %1508 = vset.pattern.permute.xlu2 %v1613_v59 }
  0x80   : > { %478 = vadd.xlane.f32.xlu0 %v477_v13  ;;  %1507 = vset.pattern.permute.xlu1 %v1613_v59 }
  0x81   : > { %1506 = vset.pattern.permute.xlu0 %v1613_v59 }
  0x86   : > { %498 = vadd.xlane.f32.xlu2 %v497_v0 }
  0x87   : > { %494 = vadd.xlane.f32.xlu1 %v493_v22 }
  0x88   : > { %490 = vadd.xlane.f32.xlu0 %v489_v17 }
  0x89   : > { %v291_v18 = vpop.xlane.xlu2 %290 }
  0x8a   : > { %v283_v46 = vpop.xlane.xlu1 %282  ;;  %v2012_v51 = vmul.f32 0.0051020407, %v291_v18 }
  0x8b   : > { %v275_v26 = vpop.xlane.xlu0 %274  ;;  %v2006_v49 = vmul.f32 0.0051020407, %v283_v46 }
  0x8c   : > { %v2008_v5 = vmul.f32 0.0051020407, %v275_v26  ;;  %v564_v9 = vmul.f32 %v2012_v51, %v2012_v51 }
  0x8d   : > { %v562_v56 = vmul.f32 %v2006_v49, %v2006_v49 }
  0x8e   : > { %510 = vadd.xlane.f32.xlu2 %v509_v28  ;;  %v560_v58 = vmul.f32 %v2008_v5, %v2008_v5 }
  0x8f   : > { %506 = vadd.xlane.f32.xlu1 %v505_v27 }
  0x90   : > { %502 = vadd.xlane.f32.xlu0 %v501_v47 }
  0x91   : > { %v295_v32 = vpop.xlane.xlu2 %294 }
  0x92   : > { %v287_v4 = vpop.xlane.xlu1 %286  ;;  %v2020_v62 = vmul.f32 0.0051020407, %v295_v32 }
  0x93   : > { %v279_v29 = vpop.xlane.xlu0 %278  ;;  %v2022_v63 = vmul.f32 0.0051020407, %v287_v4 }
  0x94   : > { %v2010_v50 = vmul.f32 0.0051020407, %v279_v29  ;;  %v565_v21 = vmul.f32 %v2020_v62, %v2020_v62 }
  0x95   : > { %v563_v23 = vmul.f32 %v2022_v63, %v2022_v63 }
  0x96   : > { %v561_v60 = vmul.f32 %v2010_v50, %v2010_v50 }
  0x99   : > { %v307_v54 = vpop.xlane.xlu2 %306 }
  0x9a   : > { %v303_v31 = vpop.xlane.xlu1 %302  ;;  %v2026_v8 = vmul.f32 0.0051020407, %v307_v54 }
  0x9b   : > { %v299_v34 = vpop.xlane.xlu0 %298  ;;  %v2030_v0 = vmul.f32 0.0051020407, %v303_v31 }
  0x9c   : > { %2947 = vst [vmem:[#allocation2_spill] sm:$0xff] %v2026_v8  ;;  %v2032_v22 = vmul.f32 0.0051020407, %v299_v34  ;;  %v568_v4 = vmul.f32 %v2026_v8, %v2026_v8 }
  0x9d   : > { %v567_v29 = vmul.f32 %v2030_v0, %v2030_v0 }
  0x9e   : > { %v566_v31 = vmul.f32 %v2032_v22, %v2032_v22 }
  0xa1   : > { %v319_v57 = vpop.xlane.xlu2 %318 }
  0xa2   : > { %v315_v36 = vpop.xlane.xlu1 %314  ;;  %v2038_v12 = vmul.f32 0.0051020407, %v319_v57 }
  0xa3   : > { %v311_v14 = vpop.xlane.xlu0 %310  ;;  %v2044_v16 = vmul.f32 0.0051020407, %v315_v36 }
  0xa4   : > { %2948 = vst [vmem:[#allocation3_spill] sm:$0xff] %v2038_v12  ;;  %v2046_v44 = vmul.f32 0.0051020407, %v311_v14  ;;  %v2065_v34 = vmul.f32 %v2038_v12, %v2038_v12 }
  0xa5   : > { %v2072_v14 = vmul.f32 %v2044_v16, %v2044_v16 }
  0xa6   : > { %2949 = vst [vmem:[#allocation4_spill] sm:$0xff] %v2046_v44 }
  0xa9   : > { %v331_v37 = vpop.xlane.xlu2 %330 }
  0xaa   : > { %v327_v35 = vpop.xlane.xlu1 %326  ;;  %v2049_v46 = vmul.f32 0.0051020407, %v331_v37  ;;  %v2076_v37 = vmul.f32 %v2046_v44, %v2046_v44 }
  0xab   : > { %v323_v38 = vpop.xlane.xlu0 %322  ;;  %v2051_v26 = vmul.f32 0.0051020407, %v327_v35 }
  0xac   : > { %2950 = vst [vmem:[#allocation5_spill] sm:$0xff] %v2049_v46  ;;  %v2054_v27 = vmul.f32 0.0051020407, %v323_v38  ;;  %v2080_v35 = vmul.f32 %v2049_v46, %v2049_v46 }
  0xad   : > { %2951 = vst [vmem:[#allocation6_spill] sm:$0xff] %v2051_v26 }
  0xae   : > { %2952 = vst [vmem:[#allocation7_spill] sm:$0xff] %v2054_v27 }
  0xb1   : > { %v1988_v6 = vpop.xlane.xlu2 %342 }
  0xb2   : > { %v1990_v39 = vpop.xlane.xlu1 %338  ;;  %v2068_v57 = vmul.f32 0.0051020407, %v1988_v6  ;;  %v2086_v6 = vmul.f32 %v2051_v26, %v2051_v26 }
  0xb3   : > { %v1992_v40 = vpop.xlane.xlu0 %334 }
  0xb4   : > { %2953 = vst [vmem:[#allocation8_spill] sm:$0xff] %v2068_v57 }
  0xb9   : > { %v1994_v2 = vpop.xlane.xlu2 %354 }
  0xba   : > { %v1996_v41 = vpop.xlane.xlu1 %350 }
  0xbb   : > { %v1998_v43 = vpop.xlane.xlu0 %346 }
  0xc1   : > { %v2000_v42 = vpop.xlane.xlu2 %366 }
  0xc2   : > { %v2002_v48 = vpop.xlane.xlu1 %362 }
  0xc3   : > { %v2004_v52 = vpop.xlane.xlu0 %358 }
  0xc9   : > { %v427_v19 = vpop.xlane.xlu2 %426 }
  0xca   : > { %v538_v10 = vmul.f32 0.0051020407, %v427_v19  ;;  %v423_v53 = vpop.xlane.xlu1 %422 }
  0xcb   : > { %v419_v55 = vpop.xlane.xlu0 %418  ;;  %v537_v1 = vmul.f32 0.0051020407, %v423_v53 }
  0xcc   : > { %v536_v61 = vmul.f32 0.0051020407, %v419_v55  ;;  %v586_v13 = vsub.f32 %v538_v10, %v562_v56  ;;  %v2090_v56 = vmul.f32 %v2054_v27, %v2054_v27 }
  0xcd   : > { %v585_v3 = vsub.f32 %v537_v1, %v561_v60  ;;  %v2098_v60 = vmul.f32 0.0051020407, %v1992_v40 }
  0xce   : > { %v584_v15 = vsub.f32 %v536_v61, %v560_v58  ;;  %v610_v7 = vmax.f32 %v586_v13, 0.0  ;;  %v2095_v58 = vmul.f32 0.0051020407, %v1990_v39 }
  0xcf   : > { %v609_v20 = vmax.f32 %v585_v3, 0.0  ;;  %2955 = vst [vmem:[#allocation10_spill] sm:$0xff] %v2098_v60  ;;  %v2108_v3 = vmul.f32 %v2068_v57, %v2068_v57 }
  0xd0   : > { %v608_v11 = vmax.f32 %v584_v15, 0.0  ;;  %v2034_v17 = vadd.f32 1e-05, %v610_v7  ;;  %2954 = vst [vmem:[#allocation9_spill] sm:$0xff] %v2095_v58  ;;  %v2111_v15 = vmul.f32 0.0051020407, %v1994_v2 }
  0xd1   : > { %v2040_v24 = vadd.f32 1e-05, %v609_v20  ;;  %v439_v33 = vpop.xlane.xlu2 %438  ;;  %v2118_v20 = vmul.f32 0.0051020407, %v1996_v41 }
  0xd2   : > { %v2042_v30 = vadd.f32 1e-05, %v608_v11  ;;  %1509 = vrsqrt.f32 %v2034_v17  ;;  %v541_v25 = vmul.f32 0.0051020407, %v439_v33  ;;  %v435_v45 = vpop.xlane.xlu1 %434  ;;  %2956 = vst [vmem:[#allocation11_spill] sm:$0xff] %v2111_v15  ;;  %vm682_vm2 = vweird.f32 %v2034_v17 }
  0xd3   : > { %v431_v18 = vpop.xlane.xlu0 %430  ;;  %1511 = vrsqrt.f32 %v2040_v24  ;;  %v540_v28 = vmul.f32 0.0051020407, %v435_v45  ;;  %2957 = vst [vmem:[#allocation12_spill] sm:$0xff] %v2118_v20  ;;  %vm672_vm3 = vweird.f32 %v2040_v24 }
  0xd4   : > { %1513 = vrsqrt.f32 %v2042_v30  ;;  %v589_v47 = vsub.f32 %v541_v25, %v565_v21  ;;  %v539_v32 = vmul.f32 0.0051020407, %v431_v18  ;;  %v2130_v25 = vmul.f32 %v2095_v58, %v2095_v58 }
  0xd5   : > { %v588_v54 = vsub.f32 %v540_v28, %v564_v9  ;;  %v2134_v28 = vmul.f32 %v2098_v60, %v2098_v60  ;;  %vm662_vm4 = vweird.f32 %v2042_v30  ;;  %v899_v60 = vld [vmem:[%s2176_s22 + $0x18] sm:$0xff] }
  0xd6   : > { %v587_v36 = vsub.f32 %v539_v32, %v563_v23  ;;  %v613_v10 = vmax.f32 %v589_v47, 0.0  ;;  %v2137_v47 = vmul.f32 0.0051020407, %v1998_v43 }
  0xd7   : > { %v612_v38 = vmax.f32 %v588_v54, 0.0 }
  0xd8   : > { %v2082_v19 = vpop.eup %1509  ;;  %v611_v53 = vmax.f32 %v587_v36, 0.0  ;;  %v2125_v23 = vadd.f32 1e-05, %v613_v10  ;;  %2958 = vst [vmem:[#allocation13_spill] sm:$0xff] %v2137_v47  ;;  %v2142_v36 = vmul.f32 %v2111_v15, %v2111_v15 }
  0xd9   : > { %v2092_v55 = vpop.eup %1511  ;;  %v677_v1 = vmul.f32 %v2082_v19, %v2034_v17  ;;  %v2102_v61 = vadd.f32 1e-05, %v612_v38  ;;  %v451_v59 = vpop.xlane.xlu2 %450  ;;  %v2146_v38 = vmul.f32 %v2118_v20, %v2118_v20  ;;  %vm683_vm1 = vweird.f32 %v2082_v19 }
  0xda   : > { %v2104_v13 = vpop.eup %1513  ;;  %v667_v39 = vmul.f32 %v2092_v55, %v2040_v24  ;;  %v2115_v40 = vadd.f32 1e-05, %v611_v53  ;;  %v447_v7 = vpop.xlane.xlu1 %446  ;;  %v544_v33 = vmul.f32 0.0051020407, %v451_v59  ;;  %vm673_vm5 = vweird.f32 %v2092_v55  ;;  %vm684_vm6 = vmor %vm682_vm2, %vm683_vm1 }
  0xdb   : > { %v443_v9 = vpop.xlane.xlu0 %442  ;;  %v678_v11 = vmul.f32 %v2082_v19, %v677_v1  ;;  %v657_v21 = vmul.f32 %v2104_v13, %v2042_v30  ;;  %1515 = vrsqrt.f32 %v2102_v61  ;;  %v543_v45 = vmul.f32 0.0051020407, %v447_v7  ;;  %vm674_vm8 = vmor %vm672_vm3, %vm673_vm5 }
  0xdc   : > { %v668_v2 = vmul.f32 %v2092_v55, %v667_v39  ;;  %1517 = vrsqrt.f32 %v2115_v40  ;;  %v542_v18 = vmul.f32 0.0051020407, %v443_v9  ;;  %v592_v54 = vsub.f32 %v544_v33, %v568_v4 }
  0xdd   : > { %v679_v41 = vmul.f32 0.5, %v678_v11  ;;  %v658_v32 = vmul.f32 %v2104_v13, %v657_v21  ;;  %v591_v10 = vsub.f32 %v543_v45, %v567_v29  ;;  %v2149_v1 = vmul.f32 0.0051020407, %v2000_v42 }
  0xde   : > { %v590_v53 = vsub.f32 %v542_v18, %v566_v31  ;;  %v669_v39 = vmul.f32 0.5, %v668_v2  ;;  %v616_v43 = vmax.f32 %v592_v54, 0.0  ;;  %v2155_v4 = vmul.f32 0.0051020407, %v2002_v48 }
  0xdf   : > { %2959 = vst [vmem:[#allocation14_spill] sm:$0xff] %v2149_v1  ;;  %v680_v59 = vsub.f32 1.5, %v679_v41  ;;  %1519 = vrsqrt.f32 %v2125_v23  ;;  %v615_v9 = vmax.f32 %v591_v10, 0.0  ;;  %v2161_v42 = vmul.f32 0.0051020407, %v2004_v52 }
  0xe0   : > { %2960 = vst [vmem:[#allocation15_spill] sm:$0xff] %v2155_v4  ;;  %v614_v11 = vmax.f32 %v590_v53, 0.0  ;;  %v659_v31 = vmul.f32 0.5, %v658_v32  ;;  %v2167_v18 = vadd.f32 1e-05, %v616_v43  ;;  %v670_v52 = vsub.f32 1.5, %v669_v39 }
  0xe1   : > { %v2152_v7 = vpop.eup %1515  ;;  %v463_v21 = vpop.xlane.xlu2 %462  ;;  %2961 = vst [vmem:[#allocation16_spill] sm:$0xff] %v2161_v42  ;;  %v2169_v54 = vadd.f32 1e-05, %v615_v9  ;;  %v681_v53 = vmul.f32 %v2082_v19, %v680_v59  ;;  %v898_v39 = vld [vmem:[%s2176_s22 + $0x10] sm:$0xff]  ;;  %vm663_vm7 = vweird.f32 %v2104_v13  ;;  %vm702_vm10 = vweird.f32 %v2102_v61 }
  0xe2   : > { %v2158_v29 = vpop.eup %1517  ;;  %v697_v2 = vmul.f32 %v2152_v7, %v2102_v61  ;;  %v547_v33 = vmul.f32 0.0051020407, %v463_v21  ;;  %v459_v41 = vpop.xlane.xlu1 %458  ;;  %v2179_v32 = vadd.f32 1e-05, %v614_v11  ;;  %v660_v9 = vsub.f32 1.5, %v659_v31  ;;  %vm664_vm9 = vmor %vm662_vm4, %vm663_vm7 }
  0xe3   : > { %v455_v45 = vpop.xlane.xlu0 %454  ;;  %v687_v48 = vmul.f32 %v2158_v29, %v2115_v40  ;;  %1521 = vrsqrt.f32 %v2169_v54  ;;  %v546_v17 = vmul.f32 0.0051020407, %v459_v41  ;;  %v685_v31 = vsel %vm684_vm6, %v2082_v19, %v681_v53 }
  0xe4   : > { %v595_v10 = vsub.f32 %v547_v33, %v2065_v34  ;;  %v698_v43 = vmul.f32 %v2152_v7, %v697_v2  ;;  %1523 = vrsqrt.f32 %v2167_v18  ;;  %v545_v59 = vmul.f32 0.0051020407, %v455_v45  ;;  %v897_v33 = vld [vmem:[%s2176_s22 + $0x8] sm:$0xff] }
  0xe5   : > { %v2190_v11 = vpop.eup %1519  ;;  %v688_v34 = vmul.f32 %v2158_v29, %v687_v48  ;;  %1525 = vrsqrt.f32 %v2179_v32  ;;  %v671_v2 = vmul.f32 %v2092_v55, %v670_v52  ;;  %v594_v15 = vsub.f32 %v546_v17, %v2072_v14 }
  0xe6   : > { %v619_v21 = vmax.f32 %v595_v10, 0.0  ;;  %v699_v10 = vmul.f32 0.5, %v698_v43  ;;  %v593_v48 = vsub.f32 %v545_v59, %v2076_v37  ;;  %v2203_v41 = vmul.f32 %v898_v39, %v685_v31 }
  0xe7   : > { %v707_v19 = vmul.f32 %v2190_v11, %v2125_v23  ;;  %v675_v53 = vsel %vm674_vm8, %v2092_v55, %v671_v2  ;;  %v661_v14 = vmul.f32 %v2104_v13, %v660_v9  ;;  %v689_v39 = vmul.f32 0.5, %v688_v34 }
  0xe8   : > { %v2211_v52 = vadd.f32 1e-05, %v619_v21  ;;  %v618_v17 = vmax.f32 %v594_v15, 0.0  ;;  %v617_v59 = vmax.f32 %v593_v48, 0.0  ;;  %1028 = vperm.xlu2 %1508, %v2203_v41   ;;  %v2218_v24 = vmul.f32 %v897_v33, %v675_v53  ;;  %v896_v21 = vld [vmem:[%s2176_s22] sm:$0xff] }
  0xe9   : > { %v475_v45 = vpop.xlane.xlu2 %474  ;;  %v2215_v37 = vpop.eup %1521  ;;  %v665_v9 = vsel %vm664_vm9, %v2104_v13, %v661_v14  ;;  %v2232_v33 = vmul.f32 %v2137_v47, %v2137_v47  ;;  %v700_v48 = vsub.f32 1.5, %v699_v10  ;;  %v2252_v10 = vmul.f32 %v2155_v4, %v2155_v4 }
  0xea   : > { %v471_v43 = vpop.xlane.xlu1 %470  ;;  %v727_v55 = vmul.f32 %v2215_v37, %v2169_v54  ;;  %v550_v2 = vmul.f32 0.0051020407, %v475_v45  ;;  %v2228_v15 = vpop.eup %1523  ;;  %v2234_v53 = vadd.f32 1e-05, %v618_v17  ;;  %v2236_v30 = vadd.f32 1e-05, %v617_v59  ;;  %1023 = vperm.xlu1 %1507, %v2218_v24  }
  0xeb   : > { %v467_v31 = vpop.xlane.xlu0 %466  ;;  %v549_v34 = vmul.f32 0.0051020407, %v471_v43  ;;  %v2239_v57 = vpop.eup %1525  ;;  %1527 = vrsqrt.f32 %v2211_v52  ;;  %v2242_v13 = vmul.f32 %v896_v21, %v665_v9  ;;  %v2248_v43 = vmul.f32 %v2149_v1, %v2149_v1 }
  0xec   : > { %v598_v45 = vsub.f32 %v550_v2, %v2080_v35  ;;  %v728_v17 = vmul.f32 %v2215_v37, %v727_v55  ;;  %1529 = vrsqrt.f32 %v2234_v53  ;;  %v2258_v59 = vmul.f32 %v2161_v42, %v2161_v42  ;;  %v900_v42 = vld [vmem:[%s2176_s22 + $0x20] sm:$0xff] }
  0xed   : > { %v597_v14 = vsub.f32 %v549_v34, %v2086_v6  ;;  %v708_v35 = vmul.f32 %v2190_v11, %v707_v19  ;;  %v690_v6 = vsub.f32 1.5, %v689_v39  ;;  %1018 = vperm.xlu0 %1506, %v2242_v13   ;;  %v737_v9 = vmul.f32 %v2228_v15, %v2167_v18 }
  0xee   : > { %v622_v21 = vmax.f32 %v598_v45, 0.0  ;;  %v717_v2 = vmul.f32 %v2239_v57, %v2179_v32  ;;  %1531 = vrsqrt.f32 %v2236_v30  ;;  %v548_v1 = vmul.f32 0.0051020407, %v467_v31 }
  0xef   : > { %v621_v55 = vmax.f32 %v597_v14, 0.0  ;;  %v701_v19 = vmul.f32 %v2152_v7, %v700_v48  ;;  %vm692_vm11 = vweird.f32 %v2115_v40  ;;  %v729_v39 = vmul.f32 0.5, %v728_v17 }
  0xf0   : > { %v2268_v34 = vadd.f32 1e-05, %v622_v21  ;;  %vm703_vm12 = vweird.f32 %v2152_v7  ;;  %v2278_v47 = vmul.f32 0.5, %v708_v35  ;;  %v596_v61 = vsub.f32 %v548_v1, %v2090_v56 }
  0xf1   : > { %v2272_v45 = vadd.f32 1e-05, %v621_v55  ;;  %v2276_v4 = vpop.eup %1527  ;;  %vm704_vm13 = vmor %vm702_vm10, %vm703_vm12  ;;  %v691_v31 = vmul.f32 %v2158_v29, %v690_v6  ;;  %v487_v48 = vpop.xlane.xlu2 %486  ;;  %v738_v21 = vmul.f32 %v2228_v15, %v737_v9  ;;  %v718_v55 = vmul.f32 %v2239_v57, %v717_v2 }
  0xf2   : > { %1533 = vrsqrt.f32 %v2268_v34  ;;  %v483_v14 = vpop.xlane.xlu1 %482  ;;  %v2283_v17 = vpop.eup %1529  ;;  %v705_v35 = vsel %vm704_vm13, %v2152_v7, %v701_v19  ;;  %vm732_vm14 = vweird.f32 %v2169_v54  ;;  %v620_v1 = vmax.f32 %v596_v61, 0.0 }
  0xf3   : > { %1535 = vrsqrt.f32 %v2272_v45  ;;  %v479_v20 = vpop.xlane.xlu0 %478  ;;  %v757_v56 = vmul.f32 %v2283_v17, %v2234_v53  ;;  %v2292_v6 = vmul.f32 %v900_v42, %v705_v35  ;;  %vm693_vm15 = vweird.f32 %v2158_v29 }
  0xf4   : > { %v2296_v46 = vpop.eup %1531  ;;  %v730_v9 = vsub.f32 1.5, %v729_v39  ;;  %v767_v2 = vmul.f32 %v2276_v4, %v2211_v52  ;;  %vm694_vm1 = vmor %vm692_vm11, %vm693_vm15  ;;  %v553_v7 = vmul.f32 0.0051020407, %v487_v48  ;;  %v552_v19 = vmul.f32 0.0051020407, %v483_v14 }
  0xf5   : > { %v758_v58 = vmul.f32 %v2283_v17, %v757_v56  ;;  %v2303_v27 = vadd.f32 1e-05, %v620_v1  ;;  %1038 = vperm.xlu1 %1507, %v2292_v6   ;;  %v695_v42 = vsel %vm694_vm1, %v2158_v29, %v691_v31  ;;  %v551_v61 = vmul.f32 0.0051020407, %v479_v20 }
  0xf6   : > { %v2307_v35 = vmul.f32 0.5, %v738_v21  ;;  %v2309_v39 = vmul.f32 %v899_v60, %v695_v42  ;;  %v601_v12 = vsub.f32 %v553_v7, %v2108_v3  ;;  %v600_v40 = vsub.f32 %v552_v19, %v2130_v25 }
  0xf7   : > { %vm712_vm2 = vweird.f32 %v2125_v23  ;;  %v719_v48 = vmul.f32 0.5, %v718_v55  ;;  %v747_v14 = vmul.f32 %v2296_v46, %v2236_v30  ;;  %1537 = vrsqrt.f32 %v2303_v27 }
  0xf8   : > { %v2313_v26 = vpop.eup %1533  ;;  %v599_v20 = vsub.f32 %v551_v61, %v2134_v28  ;;  %vm722_vm3 = vweird.f32 %v2179_v32  ;;  %v768_v60 = vmul.f32 %v2276_v4, %v767_v2  ;;  %v759_v3 = vmul.f32 0.5, %v758_v58  ;;  %1033 = vperm.xlu2 %1508, %v2309_v39  }
  0xf9   : > { %v2320_v29 = vpop.eup %1535  ;;  %v625_v25 = vmax.f32 %v601_v12, 0.0  ;;  %v624_v31 = vmax.f32 %v600_v40, 0.0  ;;  %v710_v21 = vsub.f32 1.5, %v2278_v47  ;;  %v797_v55 = vmul.f32 %v2313_v26, %v2268_v34  ;;  %v903_v47 = vld [vmem:[%s2176_s22 + $0x38] sm:$0xff]  ;;  %v499_v40 = vpop.xlane.xlu2 %498 }
  0xfa   : > { %v623_v56 = vmax.f32 %v599_v20, 0.0  ;;  %v731_v28 = vmul.f32 %v2215_v37, %v730_v9  ;;  %vm762_vm4 = vweird.f32 %v2234_v53  ;;  %v787_v1 = vmul.f32 %v2320_v29, %v2272_v45 }
  0xfb   : > { %v2332_v2 = vadd.f32 1e-05, %v625_v25  ;;  %v2334_v58 = vadd.f32 1e-05, %v624_v31  ;;  %v720_v7 = vsub.f32 1.5, %v719_v48  ;;  %v748_v12 = vmul.f32 %v2296_v46, %v747_v14 }
  0xfc   : > { %v2337_v19 = vadd.f32 1e-05, %v623_v56  ;;  %vm733_vm5 = vweird.f32 %v2215_v37  ;;  %v740_v42 = vsub.f32 1.5, %v2307_v35  ;;  %v2342_v9 = vmul.f32 0.5, %v768_v60  ;;  %v495_v60 = vpop.xlane.xlu1 %494  ;;  %v902_v56 = vld [vmem:[%s2176_s22 + $0x30] sm:$0xff] }
  0xfd   : > { %v760_v61 = vsub.f32 1.5, %v759_v3  ;;  %1539 = vrsqrt.f32 %v2332_v2  ;;  %vm734_vm6 = vmor %vm732_vm14, %vm733_vm5  ;;  %v2347_v48 = vpop.eup %1537  ;;  %v798_v14 = vmul.f32 %v2313_v26, %v797_v55  ;;  %v711_v35 = vmul.f32 %v2190_v11, %v710_v21  ;;  %v491_v3 = vpop.xlane.xlu0 %490 }
  0xfe   : > { %1541 = vrsqrt.f32 %v2334_v58  ;;  %v735_v20 = vsel %vm734_vm6, %v2215_v37, %v731_v28  ;;  %vm742_vm7 = vweird.f32 %v2167_v18  ;;  %v788_v54 = vmul.f32 %v2320_v29, %v787_v1  ;;  %v901_v37 = vld [vmem:[%s2176_s22 + $0x28] sm:$0xff] }
  0xff   : > { %v777_v25 = vmul.f32 %v2347_v48, %v2303_v27  ;;  %1543 = vrsqrt.f32 %v2337_v19  ;;  %v2358_v31 = vmul.f32 %v903_v47, %v735_v20  ;;  %v2360_v55 = vmul.f32 0.5, %v748_v12 }
 0x100   : > { %vm713_vm8 = vweird.f32 %v2190_v11  ;;  %v721_v21 = vmul.f32 %v2239_v57, %v720_v7  ;;  %vm723_vm9 = vweird.f32 %v2239_v57  ;;  %v556_v1 = vmul.f32 0.0051020407, %v499_v40 }
 0x101   : > { %v778_v28 = vmul.f32 %v2347_v48, %v777_v25  ;;  %1053 = vperm.xlu0 %1506, %v2358_v31   ;;  %vm714_vm10 = vmor %vm712_vm2, %vm713_vm8  ;;  %v555_v47 = vmul.f32 0.0051020407, %v495_v60  ;;  %v554_v20 = vmul.f32 0.0051020407, %v491_v3  ;;  %v2371_v12 = vmul.f32 0.5, %v798_v14 }
 0x102   : > { %v715_v44 = vsel %vm714_vm10, %v2190_v11, %v711_v35  ;;  %vm724_vm11 = vmor %vm722_vm3, %vm723_vm9  ;;  %v761_v7 = vmul.f32 %v2283_v17, %v760_v61  ;;  %vm763_vm12 = vweird.f32 %v2283_v17  ;;  %v789_v8 = vmul.f32 0.5, %v788_v54 }
 0x103   : > { %v2378_v25 = vpop.eup %1539  ;;  %v2380_v23 = vmul.f32 %v901_v37, %v715_v44  ;;  %v725_v40 = vsel %vm724_vm11, %v2239_v57, %v721_v21  ;;  %v604_v14 = vsub.f32 %v556_v1, %v2142_v36  ;;  %vm752_vm13 = vweird.f32 %v2236_v30  ;;  %vm2393_vm14 = vmor %vm762_vm4, %vm763_vm12  ;;  %v906_v44 = vld [vmem:[%s2176_s22 + $0x50] sm:$0xff] }
 0x104   : > { %v2384_v60 = vpop.eup %1541  ;;  %v2387_v11 = vmul.f32 %v902_v56, %v725_v40  ;;  %v603_v32 = vsub.f32 %v555_v47, %v2146_v38  ;;  %v602_v61 = vsub.f32 %v554_v20, %v2232_v33  ;;  %v741_v57 = vmul.f32 %v2228_v15, %v740_v42 }
 0x105   : > { %v2399_v36 = vpop.eup %1543  ;;  %v2401_v3 = vmul.f32 0.5, %v778_v28  ;;  %v817_v54 = vmul.f32 %v2384_v60, %v2334_v58  ;;  %1043 = vperm.xlu2 %1508, %v2380_v23   ;;  %v628_v38 = vmax.f32 %v604_v14, 0.0  ;;  %v765_v33 = vsel %vm2393_vm14, %v2283_v17, %v761_v7  ;;  %v904_v14 = vld [vmem:[%s2176_s22 + $0x40] sm:$0xff] }
 0x106   : > { %vm772_vm15 = vweird.f32 %v2211_v52  ;;  %v827_v53 = vmul.f32 %v2378_v25, %v2332_v2  ;;  %v807_v42 = vmul.f32 %v2399_v36, %v2337_v19  ;;  %1048 = vperm.xlu1 %1507, %v2387_v11   ;;  %v627_v37 = vmax.f32 %v603_v32, 0.0 }
 0x107   : > { %v626_v21 = vmax.f32 %v602_v61, 0.0  ;;  %v818_v56 = vmul.f32 %v2384_v60, %v817_v54  ;;  %v2416_v28 = vadd.f32 1e-05, %v628_v38  ;;  %v2418_v1 = vmul.f32 %v906_v44, %v765_v33  ;;  %v511_v61 = vpop.xlane.xlu2 %510  ;;  %v503_v54 = vpop.xlane.xlu0 %502 }
 0x108   : > { %vm743_vm1 = vweird.f32 %v2228_v15  ;;  %v750_v17 = vsub.f32 1.5, %v2360_v55  ;;  %v808_v47 = vmul.f32 %v2399_v36, %v807_v42  ;;  %v2423_v20 = vadd.f32 1e-05, %v627_v37 }
 0x109   : > { %v2425_v7 = vadd.f32 1e-05, %v626_v21  ;;  %vm2429_vm2 = vmor %vm742_vm7, %vm743_vm1  ;;  %v790_v32 = vsub.f32 1.5, %v789_v8  ;;  %vm792_vm3 = vweird.f32 %v2272_v45  ;;  %1545 = vrsqrt.f32 %v2416_v28  ;;  %1068 = vperm.xlu0 %1506, %v2418_v1   ;;  %v507_v8 = vpop.xlane.xlu1 %506 }
 0x10a   : > { %v745_v55 = vsel %vm2429_vm2, %v2228_v15, %v741_v57  ;;  %v770_v18 = vsub.f32 1.5, %v2342_v9  ;;  %v800_v35 = vsub.f32 1.5, %v2371_v12  ;;  %v780_v44 = vsub.f32 1.5, %v2401_v3  ;;  %v905_v3 = vld [vmem:[%s2176_s22 + $0x48] sm:$0xff] }
 0x10b   : > { %1547 = vrsqrt.f32 %v2423_v20  ;;  %v828_v38 = vmul.f32 %v2378_v25, %v827_v53  ;;  %v2445_v33 = vmul.f32 0.5, %v818_v56  ;;  %v2448_v15 = vmul.f32 %v904_v14, %v745_v55  ;;  %v909_v56 = vld [vmem:[%s2176_s22 + $0x68] sm:$0xff] }
 0x10c   : > { %1549 = vrsqrt.f32 %v2425_v7  ;;  %vm782_vm4 = vweird.f32 %v2303_v27  ;;  %v2451_v9 = vmul.f32 0.5, %v808_v47  ;;  %v751_v57 = vmul.f32 %v2296_v46, %v750_v17 }
 0x10d   : > { %vm753_vm5 = vweird.f32 %v2296_v46  ;;  %v559_v42 = vmul.f32 0.0051020407, %v511_v61  ;;  %1058 = vperm.xlu2 %1508, %v2448_v15   ;;  %v558_v53 = vmul.f32 0.0051020407, %v507_v8  ;;  %v557_v37 = vmul.f32 0.0051020407, %v503_v54 }
 0x10e   : > { %vm754_vm6 = vmor %vm752_vm13, %vm753_vm5  ;;  %v791_v21 = vmul.f32 %v2320_v29, %v790_v32  ;;  %vm793_vm7 = vweird.f32 %v2320_v29  ;;  %v771_v40 = vmul.f32 %v2276_v4, %v770_v18  ;;  %vm773_vm9 = vweird.f32 %v2276_v4 }
 0x10f   : > { %v755_v47 = vsel %vm754_vm6, %v2296_v46, %v751_v57  ;;  %v607_v17 = vsub.f32 %v559_v42, %v2248_v43  ;;  %vm794_vm8 = vmor %vm792_vm3, %vm793_vm7  ;;  %v2468_v30 = vpop.eup %1545  ;;  %v606_v32 = vsub.f32 %v558_v53, %v2252_v10  ;;  %v605_v55 = vsub.f32 %v557_v37, %v2258_v59  ;;  %v907_v43 = vld [vmem:[%s2176_s22 + $0x58] sm:$0xff] }
 0x110   : > { %v2470_v14 = vmul.f32 %v905_v3, %v755_v47  ;;  %v795_v61 = vsel %vm794_vm8, %v2320_v29, %v791_v21  ;;  %vm2477_vm10 = vmor %vm772_vm15, %vm773_vm9  ;;  %vm802_vm11 = vweird.f32 %v2268_v34  ;;  %v820_v18 = vsub.f32 1.5, %v2445_v33  ;;  %v911_v34 = vld [vmem:[%s2176_s22 + $0x78] sm:$0xff] }
 0x111   : > { %v2482_v45 = vpop.eup %1547  ;;  %v631_v8 = vmax.f32 %v607_v17, 0.0  ;;  %v2486_v54 = vmul.f32 %v909_v56, %v795_v61  ;;  %v775_v10 = vsel %vm2477_vm10, %v2276_v4, %v771_v40  ;;  %v857_v52 = vmul.f32 %v2468_v30, %v2416_v28 }
 0x112   : > { %v2491_v59 = vpop.eup %1549  ;;  %v847_v29 = vmul.f32 %v2482_v45, %v2423_v20  ;;  %1063 = vperm.xlu1 %1507, %v2470_v14   ;;  %v630_v57 = vmax.f32 %v606_v32, 0.0  ;;  %v629_v33 = vmax.f32 %v605_v55, 0.0  ;;  %v2503_v4 = vmul.f32 %v907_v43, %v775_v10  ;;  %v908_v32 = vld [vmem:[%s2176_s22 + $0x60] sm:$0xff] }
 0x113   : > { %v837_v3 = vmul.f32 %v2491_v59, %v2425_v7  ;;  %v2500_v42 = vadd.f32 1e-05, %v631_v8  ;;  %1083 = vperm.xlu0 %1506, %v2486_v54   ;;  %v781_v53 = vmul.f32 %v2347_v48, %v780_v44  ;;  %vm783_vm12 = vweird.f32 %v2347_v48  ;;  %v912_v8 = vld [vmem:[%s2176_s22 + $0x80] sm:$0xff] }
 0x114   : > { %v848_v37 = vmul.f32 %v2482_v45, %v847_v29  ;;  %v2507_v21 = vadd.f32 1e-05, %v630_v57  ;;  %v2509_v56 = vadd.f32 1e-05, %v629_v33  ;;  %v829_v47 = vmul.f32 0.5, %v828_v38  ;;  %vm784_vm15 = vmor %vm782_vm4, %vm783_vm12 }
 0x115   : > { %v810_v17 = vsub.f32 1.5, %v2451_v9  ;;  %v838_v40 = vmul.f32 %v2491_v59, %v837_v3  ;;  %1551 = vrsqrt.f32 %v2500_v42  ;;  %vm822_vm13 = vweird.f32 %v2334_v58  ;;  %1073 = vperm.xlu2 %1508, %v2503_v4  }
 0x116   : > { %vm812_vm14 = vweird.f32 %v2337_v19  ;;  %v849_v44 = vmul.f32 0.5, %v848_v37  ;;  %1553 = vrsqrt.f32 %v2507_v21  ;;  %v858_v38 = vmul.f32 %v2468_v30, %v857_v52 }
 0x117   : > { %v839_v9 = vmul.f32 0.5, %v838_v40  ;;  %1555 = vrsqrt.f32 %v2509_v56  ;;  %v785_v55 = vsel %vm784_vm15, %v2347_v48, %v781_v53  ;;  %v821_v43 = vmul.f32 %v2384_v60, %v820_v18  ;;  %v910_v48 = vld [vmem:[%s2176_s22 + $0x70] sm:$0xff] }
 0x118   : > { %v850_v61 = vsub.f32 1.5, %v849_v44  ;;  %v2525_v46 = vmul.f32 %v908_v32, %v785_v55  ;;  %vm823_vm1 = vweird.f32 %v2384_v60  ;;  %v830_v10 = vsub.f32 1.5, %v829_v47  ;;  %v915_v44 = vld [vmem:[%s2176_s22 + $0x98] sm:$0xff] }
 0x119   : > { %vm824_vm2 = vmor %vm822_vm13, %vm823_vm1  ;;  %v801_v27 = vmul.f32 %v2313_v26, %v800_v35  ;;  %vm803_vm3 = vweird.f32 %v2313_v26  ;;  %v811_v52 = vmul.f32 %v2399_v36, %v810_v17  ;;  %vm813_vm5 = vweird.f32 %v2399_v36 }
 0x11a   : > { %1078 = vperm.xlu1 %1507, %v2525_v46   ;;  %v825_v18 = vsel %vm824_vm2, %v2384_v60, %v821_v43  ;;  %vm804_vm4 = vmor %vm802_vm11, %vm803_vm3  ;;  %v851_v58 = vmul.f32 %v2482_v45, %v850_v61  ;;  %vm853_vm6 = vweird.f32 %v2482_v45  ;;  %v840_v35 = vsub.f32 1.5, %v839_v9 }
 0x11b   : > { %v2545_v12 = vpop.eup %1551  ;;  %v2547_v29 = vmul.f32 %v912_v8, %v825_v18  ;;  %v805_v57 = vsel %vm804_vm4, %v2313_v26, %v801_v27  ;;  %vm2552_vm7 = vmor %vm812_vm14, %vm813_vm5  ;;  %v859_v3 = vmul.f32 0.5, %v858_v38  ;;  %vm852_vm8 = vweird.f32 %v2423_v20 }
 0x11c   : > { %v1554_v33 = vpop.eup %1553  ;;  %v2558_v53 = vmul.f32 %v910_v48, %v805_v57  ;;  %v815_v37 = vsel %vm2552_vm7, %v2399_v36, %v811_v52  ;;  %v887_v26 = vmul.f32 %v2545_v12, %v2500_v42  ;;  %vm2571_vm9 = vmor %vm852_vm8, %vm853_vm6  ;;  %v831_v20 = vmul.f32 %v2378_v25, %v830_v10 }
 0x11d   : > { %v2563_v47 = vpop.eup %1555  ;;  %v877_v19 = vmul.f32 %v1554_v33, %v2507_v21  ;;  %1098 = vperm.xlu0 %1506, %v2547_v29   ;;  %vm833_vm10 = vweird.f32 %v2378_v25  ;;  %v2580_v40 = vmul.f32 %v911_v34, %v815_v37  ;;  %v855_v32 = vsel %vm2571_vm9, %v2482_v45, %v851_v58 }
 0x11e   : > { %v867_v36 = vmul.f32 %v2563_v47, %v2509_v56  ;;  %1088 = vperm.xlu2 %1508, %v2558_v53   ;;  %vm832_vm11 = vweird.f32 %v2332_v2  ;;  %v841_v9 = vmul.f32 %v2491_v59, %v840_v35  ;;  %vm843_vm12 = vweird.f32 %v2491_v59  ;;  %v913_v2 = vld [vmem:[%s2176_s22 + $0x88] sm:$0xff] }
 0x11f   : > { %v878_v38 = vmul.f32 %v1554_v33, %v877_v19  ;;  %v860_v55 = vsub.f32 1.5, %v859_v3  ;;  %vm842_vm13 = vweird.f32 %v2425_v7  ;;  %vm834_vm14 = vmor %vm832_vm11, %vm833_vm10  ;;  %v888_v43 = vmul.f32 %v2545_v12, %v887_v26  ;;  %v914_v7 = vld [vmem:[%s2176_s22 + $0x90] sm:$0xff]  ;;  %v916_v19 = vld [vmem:[%s2176_s22 + $0xa0] sm:$0xff] }
 0x120   : > { %v868_v61 = vmul.f32 %v2563_v47, %v867_v36  ;;  %v2592_v10 = vmul.f32 %v915_v44, %v855_v32  ;;  %v835_v45 = vsel %vm834_vm14, %v2378_v25, %v831_v20  ;;  %vm844_vm15 = vmor %vm842_vm13, %vm843_vm12  ;;  %vm883_vm1 = vweird.f32 %v1554_v33  ;;  %v945_v20 = vld [vmem:[%s2628_s25 + $0x8] sm:$0xff]  ;;  %v919_v32 = vld [vmem:[%s2176_s22 + $0xb8] sm:$0xff] }
 0x121   : > { %v879_v8 = vmul.f32 0.5, %v878_v38  ;;  %v845_v52 = vsel %vm844_vm15, %v2491_v59, %v841_v9  ;;  %vm882_vm2 = vweird.f32 %v2507_v21  ;;  %v2600_v58 = vmul.f32 %v913_v2, %v835_v45  ;;  %v918_v59 = vld [vmem:[%s2176_s22 + $0xb0] sm:$0xff]  ;;  %v951_v45 = vld [vmem:[%s2628_s25 + $0x38] sm:$0xff] }
 0x122   : > { %v869_v27 = vmul.f32 0.5, %v868_v61  ;;  %1093 = vperm.xlu1 %1507, %v2580_v40   ;;  %v889_v35 = vmul.f32 0.5, %v888_v43  ;;  %v861_v57 = vmul.f32 %v2468_v30, %v860_v55  ;;  %vm863_vm3 = vweird.f32 %v2468_v30  ;;  %vm884_vm4 = vmor %vm882_vm2, %vm883_vm1  ;;  %v946_v61 = vld [vmem:[%s2628_s25 + $0x10] sm:$0xff] }
 0x123   : > { %v880_v48 = vsub.f32 1.5, %v879_v8  ;;  %v2606_v60 = vmul.f32 %v914_v7, %v845_v52  ;;  %vm862_vm5 = vweird.f32 %v2416_v28  ;;  %vm873_vm6 = vweird.f32 %v2563_v47  ;;  %v2972_v52 = vld [vmem:[#allocation2_spill] sm:$0xff] }
 0x124   : > { %v870_v18 = vsub.f32 1.5, %v869_v27  ;;  %vm864_vm7 = vmor %vm862_vm5, %vm863_vm3  ;;  %v890_v3 = vsub.f32 1.5, %v889_v35  ;;  %vm872_vm8 = vweird.f32 %v2509_v56  ;;  %vm893_vm10 = vweird.f32 %v2545_v12  ;;  %v2973_v35 = vld [vmem:[#allocation4_spill] sm:$0xff] }
 0x125   : > { %1113 = vperm.xlu0 %1506, %v2592_v10   ;;  %v881_v25 = vmul.f32 %v1554_v33, %v880_v48  ;;  %v865_v26 = vsel %vm864_vm7, %v2468_v30, %v861_v57  ;;  %vm874_vm9 = vmor %vm872_vm8, %vm873_vm6  ;;  %vm892_vm11 = vweird.f32 %v2500_v42  ;;  %v968_v9 = vmul.f32 %v2242_v13, %v2008_v5  ;;  %v944_v42 = vld [vmem:[%s2628_s25] sm:$0xff]  ;;  %v947_v13 = vld [vmem:[%s2628_s25 + $0x18] sm:$0xff] }
 0x126   : > { %1103 = vperm.xlu2 %1508, %v2600_v58   ;;  %v871_v34 = vmul.f32 %v2563_v47, %v870_v18  ;;  %v2620_v17 = vmul.f32 %v916_v19, %v865_v26  ;;  %v891_v30 = vmul.f32 %v2545_v12, %v890_v3  ;;  %vm894_vm12 = vmor %vm892_vm11, %vm893_vm10  ;;  %v970_v55 = vmul.f32 %v2203_v41, %v2006_v49  ;;  %v949_v41 = vld [vmem:[%s2628_s25 + $0x28] sm:$0xff]  ;;  %v954_v48 = vld [vmem:[%s2628_s25 + $0x50] sm:$0xff] }
 0x127   : > { %v885_v21 = vsel %vm884_vm4, %v1554_v33, %v881_v25  ;;  %v917_v33 = vld [vmem:[%s2176_s22 + $0xa8] sm:$0xff]  ;;  %v971_v5 = vmul.f32 %v2309_v39, %v2022_v63  ;;  %v973_v49 = vmul.f32 %v2380_v23, %v2020_v62  ;;  %v974_v63 = vmul.f32 %v2387_v11, %v2032_v22  ;;  %v950_v39 = vld [vmem:[%s2628_s25 + $0x30] sm:$0xff]  ;;  %v952_v23 = vld [vmem:[%s2628_s25 + $0x40] sm:$0xff] }
 0x128   : > { %v2613_v37 = vmul.f32 %v918_v59, %v885_v21  ;;  %v875_v28 = vsel %vm874_vm9, %v2563_v47, %v871_v34  ;;  %v969_v47 = vmul.f32 %v2218_v24, %v2010_v50  ;;  %v895_v36 = vsel %vm894_vm12, %v2545_v12, %v891_v30  ;;  %v948_v12 = vld [vmem:[%s2628_s25 + $0x20] sm:$0xff]  ;;  %v953_v25 = vld [vmem:[%s2628_s25 + $0x48] sm:$0xff]  ;;  %v955_v34 = vld [vmem:[%s2628_s25 + $0x58] sm:$0xff] }
 0x129   : > { %v2633_v56 = vmul.f32 %v917_v33, %v875_v28  ;;  %v2642_v38 = vmul.f32 %v919_v32, %v895_v36  ;;  %v972_v50 = vmul.f32 %v2292_v6, %v2012_v51  ;;  %v992_v24 = vsub.f32 %v944_v42, %v968_v9  ;;  %v2975_v59 = vld [vmem:[#allocation3_spill] sm:$0xff]  ;;  %v956_v28 = vld [vmem:[%s2628_s25 + $0x60] sm:$0xff]  ;;  %v958_v32 = vld [vmem:[%s2628_s25 + $0x70] sm:$0xff] }
 0x12a   : > { %1108 = vperm.xlu1 %1507, %v2606_v60   ;;  %v993_v44 = vsub.f32 %v945_v20, %v969_v47  ;;  %v994_v8 = vsub.f32 %v946_v61, %v970_v55  ;;  %v975_v51 = vmul.f32 %v2358_v31, %v2030_v0  ;;  %v995_v6 = vsub.f32 %v947_v13, %v971_v5  ;;  %v2978_v20 = vld [vmem:[#allocation5_spill] sm:$0xff] }
 0x12b   : > { %v996_v43 = vsub.f32 %v948_v12, %v972_v50  ;;  %v997_v27 = vsub.f32 %v949_v41, %v973_v49  ;;  %v978_v0 = vmul.f32 %v2418_v1, %v2044_v16  ;;  %v998_v31 = vsub.f32 %v950_v39, %v974_v63  ;;  %v2974_v16 = vld [vmem:[#allocation6_spill] sm:$0xff]  ;;  %v959_v50 = vld [vmem:[%s2628_s25 + $0x78] sm:$0xff] }
 0x12c   : > { %v999_v2 = vsub.f32 %v951_v45, %v975_v51  ;;  %v976_v62 = vmul.f32 %v2448_v15, %v2972_v52  ;;  %v977_v22 = vmul.f32 %v2470_v14, %v2973_v35  ;;  %v981_v1 = vmul.f32 %v2486_v54, %v2974_v16  ;;  %v957_v15 = vld [vmem:[%s2628_s25 + $0x68] sm:$0xff]  ;;  %v2977_v54 = vld [vmem:[#allocation9_spill] sm:$0xff]  ;;  %v964_v39 = vld [vmem:[%s2628_s25 + $0xa0] sm:$0xff] }
 0x12d   : > { %1128 = vperm.xlu0 %1506, %v2613_v37   ;;  %v1002_v7 = vsub.f32 %v954_v48, %v978_v0  ;;  %v979_v21 = vmul.f32 %v2503_v4, %v2975_v59  ;;  %v2976_v14 = vld [vmem:[#allocation7_spill] sm:$0xff]  ;;  %v984_v30 = vmul.f32 %v2547_v29, %v2977_v54  ;;  %v960_v4 = vld [vmem:[%s2628_s25 + $0x80] sm:$0xff]  ;;  %v982_v36 = vmul.f32 %v2558_v53, %v2978_v20  ;;  %v963_v61 = vld [vmem:[%s2628_s25 + $0x98] sm:$0xff] }
 0x12e   : > { %1118 = vperm.xlu2 %1508, %v2620_v17   ;;  %v1000_v18 = vsub.f32 %v952_v23, %v976_v62  ;;  %v1001_v57 = vsub.f32 %v953_v25, %v977_v22  ;;  %v1005_v3 = vsub.f32 %v957_v15, %v981_v1  ;;  %v980_v19 = vmul.f32 %v2525_v46, %v2976_v14  ;;  %v2979_v46 = vld [vmem:[#allocation10_spill] sm:$0xff]  ;;  %v2982_v51 = vld [vmem:[#allocation13_spill] sm:$0xff]  ;;  %v2983_v45 = vld [vmem:[#allocation15_spill] sm:$0xff] }
 0x12f   : > { %v1003_v26 = vsub.f32 %v955_v34, %v979_v21  ;;  %v1006_v9 = vsub.f32 %v958_v32, %v982_v36  ;;  %v983_v42 = vmul.f32 %v2580_v40, %v2979_v46  ;;  %v986_v40 = vmul.f32 %v2606_v60, %v2982_v51  ;;  %v2985_v48 = vld [vmem:[#allocation16_spill] sm:$0xff]  ;;  %v965_v62 = vld [vmem:[%s2628_s25 + $0xa8] sm:$0xff]  ;;  %v967_v35 = vld [vmem:[%s2628_s25 + $0xb8] sm:$0xff] }
 0x130   : > { %v1004_v47 = vsub.f32 %v956_v28, %v980_v19  ;;  %v990_v49 = vmul.f32 %v2613_v37, %v2983_v45  ;;  %v989_v52 = vmul.f32 %v2633_v56, %v2985_v48  ;;  %v1557_v14 = vld [vmem:[%s1650_s18 + $0x20] sm:$0xff]  ;;  %v1558_v28 = vld [vmem:[%s1650_s18 + $0x28] sm:$0xff]  ;;  %v1559_v36 = vld [vmem:[%s1650_s18 + $0x50] sm:$0xff] }
 0x131   : > { %v1007_v12 = vsub.f32 %v959_v50, %v983_v42 }
 0x132   : > { %1123 = vperm.xlu1 %1507, %v2633_v56   ;;  %v1013_v37 = vsub.f32 %v965_v62, %v989_v52  ;;  %v1568_v52 = vld [vmem:[%s1650_s18 + $0x48] sm:$0xff] }
 0x135   : > { %1191 = vperm.xlu0 %1506, %v993_v44   ;;  %v1008_v44 = vsub.f32 %v960_v4, %v984_v30 }
 0x136   : > { %1133 = vperm.xlu2 %1508, %v2642_v38  }
 0x13a   : > { %1186 = vperm.xlu1 %1507, %v992_v24   ;;  %v2980_v24 = vld [vmem:[#allocation12_spill] sm:$0xff] }
 0x13b   : > { %v987_v29 = vmul.f32 %v2592_v10, %v2980_v24 }
 0x13d   : > { %1206 = vperm.xlu0 %1506, %v996_v43   ;;  %v2981_v43 = vld [vmem:[#allocation8_spill] sm:$0xff]  ;;  %v1011_v5 = vsub.f32 %v963_v61, %v987_v29 }
 0x13e   : > { %1196 = vperm.xlu2 %1508, %v994_v8   ;;  %v985_v53 = vmul.f32 %v2600_v58, %v2981_v43  ;;  %v961_v8 = vld [vmem:[%s2628_s25 + $0x88] sm:$0xff]  ;;  %v1562_v43 = vld [vmem:[%s1650_s18 + $0x18] sm:$0xff] }
 0x13f   : > { %v2984_v58 = vld [vmem:[#allocation11_spill] sm:$0xff] }
 0x140   : > { %v1009_v13 = vsub.f32 %v961_v8, %v985_v53  ;;  %v988_v63 = vmul.f32 %v2620_v17, %v2984_v58  ;;  %v1563_v8 = vld [vmem:[%s1650_s18 + $0x80] sm:$0xff]  ;;  %v1566_v58 = vld [vmem:[%s1650_s18 + $0x8] sm:$0xff] }
 0x142   : > { %1201 = vperm.xlu1 %1507, %v995_v6   ;;  %v2674_v11 = vpop.permute.xlu2 %1028  ;;  %v962_v6 = vld [vmem:[%s2628_s25 + $0x90] sm:$0xff]  ;;  %v1012_v60 = vsub.f32 %v964_v39, %v988_v63 }
 0x143   : > { %v1010_v41 = vsub.f32 %v962_v6, %v986_v40  ;;  %v1140_v19 = vmul.f32 %v1557_v14, %v2674_v11  ;;  %v1141_v54 = vmul.f32 %v1558_v28, %v2674_v11 }
 0x145   : > { %1221 = vperm.xlu0 %1506, %v999_v2  }
 0x146   : > { %1211 = vperm.xlu2 %1508, %v997_v27   ;;  %v966_v27 = vld [vmem:[%s2628_s25 + $0xb0] sm:$0xff] }
 0x147   : > { %v1014_v0 = vsub.f32 %v966_v27, %v990_v49  ;;  %v1565_v27 = vld [vmem:[%s1650_s18] sm:$0xff] }
 0x14a   : > { %1216 = vperm.xlu1 %1507, %v998_v31  }
 0x14d   : > { %1236 = vperm.xlu0 %1506, %v1002_v7  }
 0x14e   : > { %1226 = vperm.xlu2 %1508, %v1000_v18   ;;  %v2986_v18 = vld [vmem:[#allocation14_spill] sm:$0xff] }
 0x14f   : > { %v991_v17 = vmul.f32 %v2642_v38, %v2986_v18  ;;  %v1570_v18 = vld [vmem:[%s1650_s18 + $0xb8] sm:$0xff] }
 0x151   : > { %v1015_v22 = vsub.f32 %v967_v35, %v991_v17 }
 0x152   : > { %1231 = vperm.xlu1 %1507, %v1001_v57   ;;  %v2686_v33 = vpop.permute.xlu2 %1033 }
 0x155   : > { %1251 = vperm.xlu0 %1506, %v1005_v3  }
 0x156   : > { %1241 = vperm.xlu2 %1508, %v1003_v26  }
 0x15a   : > { %1246 = vperm.xlu1 %1507, %v1004_v47  }
 0x15c   : > { %v1024_v10 = vpop.permute.xlu1 %1023 }
 0x15d   : > { %1266 = vperm.xlu0 %1506, %v1008_v44   ;;  %v1560_v44 = vld [vmem:[%s1650_s18 + $0x58] sm:$0xff]  ;;  %v1139_v53 = vmul.f32 %v1562_v43, %v1024_v10 }
 0x15e   : > { %1256 = vperm.xlu2 %1508, %v1006_v9  }
 0x15f   : > { %v1044_v55 = vpop.permute.xlu2 %1043  ;;  %v2712_v31 = vpop.permute.xlu0 %1018 }
 0x160   : > { %v1146_v32 = vmul.f32 %v1559_v36, %v1044_v55  ;;  %v1147_v9 = vmul.f32 %v1560_v44, %v1044_v55  ;;  %v1137_v63 = vmul.f32 %v1566_v58, %v2712_v31  ;;  %v1573_v44 = vld [vmem:[%s1650_s18 + $0x70] sm:$0xff] }
 0x162   : > { %1261 = vperm.xlu1 %1507, %v1007_v12   ;;  %v1561_v12 = vld [vmem:[%s1650_s18 + $0x10] sm:$0xff] }
 0x163   : > { %v1138_v61 = vmul.f32 %v1561_v12, %v1024_v10  ;;  %v1136_v10 = vmul.f32 %v1565_v27, %v2712_v31  ;;  %v1576_v12 = vld [vmem:[%s1650_s18 + $0x78] sm:$0xff] }
 0x165   : > { %1281 = vperm.xlu0 %1506, %v1011_v5   ;;  %v1564_v5 = vld [vmem:[%s1650_s18 + $0x88] sm:$0xff] }
 0x166   : > { %1271 = vperm.xlu2 %1508, %v1009_v13  }
 0x167   : > { %v1059_v2 = vpop.permute.xlu2 %1058  ;;  %v2717_v23 = vpop.permute.xlu1 %1038 }
 0x168   : > { %v1152_v55 = vmul.f32 %v1563_v8, %v1059_v2  ;;  %v1153_v13 = vmul.f32 %v1564_v5, %v1059_v2  ;;  %v1145_v62 = vmul.f32 %v1568_v52, %v2717_v23 }
 0x16a   : > { %1276 = vperm.xlu1 %1507, %v1010_v41  }
 0x16d   : > { %1296 = vperm.xlu0 %1506, %v1014_v0  }
 0x16e   : > { %1286 = vperm.xlu2 %1508, %v1012_v60   ;;  %v1567_v60 = vld [vmem:[%s1650_s18 + $0x40] sm:$0xff] }
 0x16f   : > { %v2719_v7 = vpop.permute.xlu2 %1073  ;;  %v1144_v48 = vmul.f32 %v1567_v60, %v2717_v23 }
 0x170   : > { %v1159_v17 = vmul.f32 %v1570_v18, %v2719_v7  ;;  %v1584_v18 = vld [vmem:[%s1650_s18 + $0x98] sm:$0xff] }
 0x172   : > { %1291 = vperm.xlu1 %1507, %v1013_v37   ;;  %v1569_v37 = vld [vmem:[%s1650_s18 + $0xb0] sm:$0xff] }
 0x173   : > { %v2724_v25 = vpop.permute.xlu0 %1053  ;;  %v1158_v31 = vmul.f32 %v1569_v37, %v2719_v7 }
 0x176   : > { %1301 = vperm.xlu2 %1508, %v1015_v22  }
 0x178   : > { %v2726_v56 = vpop.permute.xlu2 %1088  ;;  %v2728_v16 = vpop.permute.xlu1 %1048 }
 0x17b   : > { %v2730_v1 = vpop.permute.xlu0 %1068 }
 0x180   : > { %v2732_v57 = vpop.permute.xlu2 %1103 }
 0x184   : > { %v2734_v15 = vpop.permute.xlu1 %1063 }
 0x185   : > { %v2736_v38 = vpop.permute.xlu0 %1083 }
 0x188   : > { %v2738_v59 = vpop.permute.xlu2 %1118 }
 0x18c   : > { %v2740_v21 = vpop.permute.xlu1 %1078 }
 0x18f   : > { %v2742_v34 = vpop.permute.xlu0 %1098 }
 0x190   : > { %v2744_v3 = vpop.permute.xlu2 %1133 }
 0x194   : > { %v2746_v26 = vpop.permute.xlu1 %1093 }
 0x197   : > { %v2752_v30 = vpop.permute.xlu0 %1113 }
 0x198   : > { %v1197_v47 = vpop.permute.xlu2 %1196 }
 0x199   : > { %v1308_v4 = vadd.f32 %v1197_v47, %v1140_v19  ;;  %v1309_v20 = vadd.f32 %v1197_v47, %v1141_v54  ;;  %v1571_v54 = vld [vmem:[%s1650_s18 + $0x30] sm:$0xff] }
 0x19a   : > { %v1142_v47 = vmul.f32 %v1571_v54, %v2686_v33  ;;  %v1587_v54 = vld [vmem:[%s1650_s18 + $0x148] sm:$0xff] }
 0x19b   : > { %1356 = vst [vmem:[%s2759_s28 + $0x20] sm:$0xff] %v1308_v4  ;;  %v1572_v4 = vld [vmem:[%s1650_s18 + $0x38] sm:$0xff] }
 0x19c   : > { %1357 = vst.msk [vmem:[%s2759_s28 + $0x28] sm:$0xff] %vm271_vm0, %v1309_v20  ;;  %v2764_v11 = vpop.permute.xlu1 %1108  ;;  %v1143_v7 = vmul.f32 %v1572_v4, %v2686_v33 }
 0x19f   : > { %v2768_v46 = vpop.permute.xlu0 %1128 }
 0x1a0   : > { %v1212_v42 = vpop.permute.xlu2 %1211 }
 0x1a1   : > { %v1314_v50 = vadd.f32 %v1212_v42, %v1146_v32  ;;  %v1315_v24 = vadd.f32 %v1212_v42, %v1147_v9  ;;  %v1150_v9 = vmul.f32 %v1573_v44, %v2724_v25  ;;  %v1574_v42 = vld [vmem:[%s1650_s18 + $0xe0] sm:$0xff] }
 0x1a3   : > { %1362 = vst [vmem:[%s2759_s28 + $0x50] sm:$0xff] %v1314_v50  ;;  %v1164_v50 = vmul.f32 %v1574_v42, %v2726_v56 }
 0x1a4   : > { %1363 = vst.msk [vmem:[%s2759_s28 + $0x58] sm:$0xff] %vm271_vm0, %v1315_v24  ;;  %v2773_v29 = vpop.permute.xlu1 %1123  ;;  %v1575_v24 = vld [vmem:[%s1650_s18 + $0xe8] sm:$0xff] }
 0x1a5   : > { %v1165_v33 = vmul.f32 %v1575_v24, %v2726_v56  ;;  %v1577_v56 = vld [vmem:[%s1650_s18 + $0x60] sm:$0xff] }
 0x1a7   : > { %v1192_v51 = vpop.permute.xlu0 %1191 }
 0x1a8   : > { %v1227_v40 = vpop.permute.xlu2 %1226  ;;  %v1306_v6 = vadd.f32 %v1192_v51, %v1138_v61  ;;  %v1307_v41 = vadd.f32 %v1192_v51, %v1139_v53  ;;  %v1151_v61 = vmul.f32 %v1576_v12, %v2724_v25  ;;  %v1148_v51 = vmul.f32 %v1577_v56, %v2728_v16 }
 0x1a9   : > { %v1320_v45 = vadd.f32 %v1227_v40, %v1152_v55  ;;  %v1321_v49 = vadd.f32 %v1227_v40, %v1153_v13  ;;  %v1578_v40 = vld [vmem:[%s1650_s18 + $0x68] sm:$0xff] }
 0x1aa   : > { %1354 = vst [vmem:[%s2759_s28 + $0x10] sm:$0xff] %v1306_v6  ;;  %v1149_v25 = vmul.f32 %v1578_v40, %v2728_v16 }
 0x1ab   : > { %1368 = vst [vmem:[%s2759_s28 + $0x80] sm:$0xff] %v1320_v45 }
 0x1ac   : > { %1369 = vst.msk [vmem:[%s2759_s28 + $0x88] sm:$0xff] %vm271_vm0, %v1321_v49  ;;  %v1187_v2 = vpop.permute.xlu1 %1186 }
 0x1ad   : > { %v1304_v39 = vadd.f32 %v1187_v2, %v1136_v10  ;;  %v1305_v0 = vadd.f32 %v1187_v2, %v1137_v63  ;;  %1355 = vst.msk [vmem:[%s2759_s28 + $0x18] sm:$0xff] %vm271_vm0, %v1307_v41  ;;  %v1579_v41 = vld [vmem:[%s1650_s18 + $0xa0] sm:$0xff]  ;;  %v1580_v10 = vld [vmem:[%s1650_s18 + $0x110] sm:$0xff]  ;;  %v1581_v63 = vld [vmem:[%s1650_s18 + $0x118] sm:$0xff] }
 0x1ae   : > { %v1156_v27 = vmul.f32 %v1579_v41, %v2730_v1  ;;  %v1170_v58 = vmul.f32 %v1580_v10, %v2732_v57  ;;  %v1171_v16 = vmul.f32 %v1581_v63, %v2732_v57  ;;  %v1582_v2 = vld [vmem:[%s1650_s18 + $0xa8] sm:$0xff]  ;;  %v1583_v57 = vld [vmem:[%s1650_s18 + $0x90] sm:$0xff]  ;;  %v1596_v41 = vld [vmem:[%s1650_s18 + $0xf8] sm:$0xff] }
 0x1af   : > { %1352 = vst [vmem:[%s2759_s28] sm:$0xff] %v1304_v39  ;;  %v1207_v35 = vpop.permute.xlu0 %1206  ;;  %v1157_v39 = vmul.f32 %v1582_v2, %v2730_v1  ;;  %v1155_v1 = vmul.f32 %v1584_v18, %v2734_v15  ;;  %v1597_v63 = vld [vmem:[%s1650_s18 + $0x130] sm:$0xff]  ;;  %v1598_v2 = vld [vmem:[%s1650_s18 + $0x138] sm:$0xff]  ;;  %v1601_v18 = vld [vmem:[%s1650_s18 + $0x160] sm:$0xff] }
 0x1b0   : > { %1353 = vst.msk [vmem:[%s2759_s28 + $0x8] sm:$0xff] %vm271_vm0, %v1305_v0  ;;  %v1242_v22 = vpop.permute.xlu2 %1241  ;;  %v1312_v14 = vadd.f32 %v1207_v35, %v1144_v48  ;;  %v1313_v28 = vadd.f32 %v1207_v35, %v1145_v62 }
 0x1b1   : > { %v1326_v19 = vadd.f32 %v1242_v22, %v1158_v31  ;;  %v1327_v23 = vadd.f32 %v1242_v22, %v1159_v17  ;;  %v1154_v31 = vmul.f32 %v1583_v57, %v2734_v15  ;;  %v1177_v15 = vmul.f32 %v1587_v54, %v2738_v59 }
 0x1b2   : > { %1360 = vst [vmem:[%s2759_s28 + $0x40] sm:$0xff] %v1312_v14  ;;  %v1585_v14 = vld [vmem:[%s1650_s18 + $0xd0] sm:$0xff] }
 0x1b3   : > { %1374 = vst [vmem:[%s2759_s28 + $0xb0] sm:$0xff] %v1326_v19  ;;  %v1162_v19 = vmul.f32 %v1585_v14, %v2736_v38 }
 0x1b4   : > { %1375 = vst.msk [vmem:[%s2759_s28 + $0xb8] sm:$0xff] %vm271_vm0, %v1327_v23  ;;  %v1202_v20 = vpop.permute.xlu1 %1201  ;;  %v1586_v23 = vld [vmem:[%s1650_s18 + $0x140] sm:$0xff] }
 0x1b5   : > { %v1310_v36 = vadd.f32 %v1202_v20, %v1142_v47  ;;  %v1311_v32 = vadd.f32 %v1202_v20, %v1143_v7  ;;  %1361 = vst.msk [vmem:[%s2759_s28 + $0x48] sm:$0xff] %vm271_vm0, %v1313_v28  ;;  %v1176_v28 = vmul.f32 %v1586_v23, %v2738_v59  ;;  %v1588_v47 = vld [vmem:[%s1650_s18 + $0xd8] sm:$0xff]  ;;  %v1589_v59 = vld [vmem:[%s1650_s18 + $0xc0] sm:$0xff] }
 0x1b6   : > { %v1163_v4 = vmul.f32 %v1588_v47, %v2736_v38  ;;  %v1160_v42 = vmul.f32 %v1589_v59, %v2740_v21 }
 0x1b7   : > { %1358 = vst [vmem:[%s2759_s28 + $0x30] sm:$0xff] %v1310_v36  ;;  %v1222_v43 = vpop.permute.xlu0 %1221 }
 0x1b8   : > { %1359 = vst.msk [vmem:[%s2759_s28 + $0x38] sm:$0xff] %vm271_vm0, %v1311_v32  ;;  %v1257_v53 = vpop.permute.xlu2 %1256  ;;  %v1318_v8 = vadd.f32 %v1222_v43, %v1150_v9  ;;  %v1319_v13 = vadd.f32 %v1222_v43, %v1151_v61  ;;  %v1591_v61 = vld [vmem:[%s1650_s18 + $0x100] sm:$0xff] }
 0x1b9   : > { %v1332_v55 = vadd.f32 %v1257_v53, %v1164_v50  ;;  %v1333_v5 = vadd.f32 %v1257_v53, %v1165_v33  ;;  %v1590_v50 = vld [vmem:[%s1650_s18 + $0xc8] sm:$0xff]  ;;  %v1168_v43 = vmul.f32 %v1591_v61, %v2742_v34  ;;  %v1592_v53 = vld [vmem:[%s1650_s18 + $0x170] sm:$0xff] }
 0x1ba   : > { %1366 = vst [vmem:[%s2759_s28 + $0x70] sm:$0xff] %v1318_v8  ;;  %v1161_v38 = vmul.f32 %v1590_v50, %v2740_v21  ;;  %v1182_v8 = vmul.f32 %v1592_v53, %v2744_v3 }
 0x1bb   : > { %1380 = vst [vmem:[%s2759_s28 + $0xe0] sm:$0xff] %v1332_v55  ;;  %v1593_v55 = vld [vmem:[%s1650_s18 + $0x178] sm:$0xff] }
 0x1bc   : > { %1381 = vst.msk [vmem:[%s2759_s28 + $0xe8] sm:$0xff] %vm271_vm0, %v1333_v5  ;;  %v1217_v6 = vpop.permute.xlu1 %1216  ;;  %v1183_v21 = vmul.f32 %v1593_v55, %v2744_v3  ;;  %v1594_v5 = vld [vmem:[%s1650_s18 + $0x108] sm:$0xff]  ;;  %v1595_v3 = vld [vmem:[%s1650_s18 + $0xf0] sm:$0xff] }
 0x1bd   : > { %v1316_v45 = vadd.f32 %v1217_v6, %v1148_v51  ;;  %v1317_v49 = vadd.f32 %v1217_v6, %v1149_v25  ;;  %1367 = vst.msk [vmem:[%s2759_s28 + $0x78] sm:$0xff] %vm271_vm0, %v1319_v13  ;;  %v1169_v13 = vmul.f32 %v1594_v5, %v2742_v34  ;;  %v1167_v34 = vmul.f32 %v1596_v41, %v2746_v26 }
 0x1bf   : > { %1364 = vst [vmem:[%s2759_s28 + $0x60] sm:$0xff] %v1316_v45  ;;  %v1237_v0 = vpop.permute.xlu0 %1236 }
 0x1c0   : > { %1365 = vst.msk [vmem:[%s2759_s28 + $0x68] sm:$0xff] %vm271_vm0, %v1317_v49  ;;  %v1272_v60 = vpop.permute.xlu2 %1271  ;;  %v1324_v48 = vadd.f32 %v1237_v0, %v1156_v27  ;;  %v1325_v37 = vadd.f32 %v1237_v0, %v1157_v39  ;;  %v1166_v49 = vmul.f32 %v1595_v3, %v2746_v26  ;;  %v1175_v39 = vmul.f32 %v1598_v2, %v2752_v30 }
 0x1c1   : > { %v1338_v52 = vadd.f32 %v1272_v60, %v1170_v58  ;;  %v1339_v62 = vadd.f32 %v1272_v60, %v1171_v16  ;;  %v1174_v16 = vmul.f32 %v1597_v63, %v2752_v30 }
 0x1c2   : > { %1372 = vst [vmem:[%s2759_s28 + $0xa0] sm:$0xff] %v1324_v48  ;;  %v1599_v48 = vld [vmem:[%s1650_s18 + $0x120] sm:$0xff] }
 0x1c3   : > { %1386 = vst [vmem:[%s2759_s28 + $0x110] sm:$0xff] %v1338_v52  ;;  %v1172_v52 = vmul.f32 %v1599_v48, %v2764_v11 }
 0x1c4   : > { %1387 = vst.msk [vmem:[%s2759_s28 + $0x118] sm:$0xff] %vm271_vm0, %v1339_v62  ;;  %v1232_v17 = vpop.permute.xlu1 %1231  ;;  %v1600_v62 = vld [vmem:[%s1650_s18 + $0x128] sm:$0xff] }
 0x1c5   : > { %v1322_v35 = vadd.f32 %v1232_v17, %v1154_v31  ;;  %v1323_v22 = vadd.f32 %v1232_v17, %v1155_v1  ;;  %1373 = vst.msk [vmem:[%s2759_s28 + $0xa8] sm:$0xff] %vm271_vm0, %v1325_v37  ;;  %v1173_v37 = vmul.f32 %v1600_v62, %v2764_v11  ;;  %v1180_v1 = vmul.f32 %v1601_v18, %v2768_v46  ;;  %v1602_v17 = vld [vmem:[%s1650_s18 + $0x168] sm:$0xff] }
 0x1c7   : > { %1370 = vst [vmem:[%s2759_s28 + $0x90] sm:$0xff] %v1322_v35  ;;  %v1252_v7 = vpop.permute.xlu0 %1251  ;;  %v1181_v35 = vmul.f32 %v1602_v17, %v2768_v46 }
 0x1c8   : > { %1371 = vst.msk [vmem:[%s2759_s28 + $0x98] sm:$0xff] %vm271_vm0, %v1323_v22  ;;  %v1287_v20 = vpop.permute.xlu2 %1286  ;;  %v1330_v36 = vadd.f32 %v1252_v7, %v1162_v19  ;;  %v1331_v9 = vadd.f32 %v1252_v7, %v1163_v4  ;;  %v1603_v19 = vld [vmem:[%s1650_s18 + $0x150] sm:$0xff] }
 0x1c9   : > { %v1344_v32 = vadd.f32 %v1287_v20, %v1176_v28  ;;  %v1345_v44 = vadd.f32 %v1287_v20, %v1177_v15  ;;  %v1178_v23 = vmul.f32 %v1603_v19, %v2773_v29  ;;  %v1604_v28 = vld [vmem:[%s1650_s18 + $0x158] sm:$0xff] }
 0x1ca   : > { %1378 = vst [vmem:[%s2759_s28 + $0xd0] sm:$0xff] %v1330_v36  ;;  %v1179_v54 = vmul.f32 %v1604_v28, %v2773_v29 }
 0x1cb   : > { %1392 = vst [vmem:[%s2759_s28 + $0x140] sm:$0xff] %v1344_v32 }
 0x1cc   : > { %1393 = vst.msk [vmem:[%s2759_s28 + $0x148] sm:$0xff] %vm271_vm0, %v1345_v44  ;;  %v1247_v24 = vpop.permute.xlu1 %1246 }
 0x1cd   : > { %v1328_v33 = vadd.f32 %v1247_v24, %v1160_v42  ;;  %v1329_v12 = vadd.f32 %v1247_v24, %v1161_v38  ;;  %1379 = vst.msk [vmem:[%s2759_s28 + $0xd8] sm:$0xff] %vm271_vm0, %v1331_v9 }
 0x1cf   : > { %1376 = vst [vmem:[%s2759_s28 + $0xc0] sm:$0xff] %v1328_v33  ;;  %v1267_v56 = vpop.permute.xlu0 %1266 }
 0x1d0   : > { %1377 = vst.msk [vmem:[%s2759_s28 + $0xc8] sm:$0xff] %vm271_vm0, %v1329_v12  ;;  %v1302_v51 = vpop.permute.xlu2 %1301  ;;  %v1336_v40 = vadd.f32 %v1267_v56, %v1168_v43  ;;  %v1337_v45 = vadd.f32 %v1267_v56, %v1169_v13 }
 0x1d1   : > { %v1350_v25 = vadd.f32 %v1302_v51, %v1182_v8  ;;  %v1351_v6 = vadd.f32 %v1302_v51, %v1183_v21 }
 0x1d2   : > { %1384 = vst [vmem:[%s2759_s28 + $0x100] sm:$0xff] %v1336_v40 }
 0x1d3   : > { %1398 = vst [vmem:[%s2759_s28 + $0x170] sm:$0xff] %v1350_v25 }
 0x1d4   : > { %1399 = vst.msk [vmem:[%s2759_s28 + $0x178] sm:$0xff] %vm271_vm0, %v1351_v6  ;;  %v1262_v27 = vpop.permute.xlu1 %1261 }
 0x1d5   : > { %v1334_v10 = vadd.f32 %v1262_v27, %v1166_v49  ;;  %v1335_v58 = vadd.f32 %v1262_v27, %v1167_v34  ;;  %1385 = vst.msk [vmem:[%s2759_s28 + $0x108] sm:$0xff] %vm271_vm0, %v1337_v45 }
 0x1d7   : > { %1382 = vst [vmem:[%s2759_s28 + $0xf0] sm:$0xff] %v1334_v10  ;;  %v1282_v26 = vpop.permute.xlu0 %1281 }
 0x1d8   : > { %1383 = vst.msk [vmem:[%s2759_s28 + $0xf8] sm:$0xff] %vm271_vm0, %v1335_v58  ;;  %v1342_v0 = vadd.f32 %v1282_v26, %v1174_v16  ;;  %v1343_v60 = vadd.f32 %v1282_v26, %v1175_v39 }
 0x1da   : > { %1390 = vst [vmem:[%s2759_s28 + $0x130] sm:$0xff] %v1342_v0 }
 0x1db   : > { %1391 = vst.msk [vmem:[%s2759_s28 + $0x138] sm:$0xff] %vm271_vm0, %v1343_v60 }
 0x1dc   : > { %v1277_v30 = vpop.permute.xlu1 %1276 }
 0x1dd   : > { %v1340_v57 = vadd.f32 %v1277_v30, %v1172_v52  ;;  %v1341_v31 = vadd.f32 %v1277_v30, %v1173_v37 }
 0x1df   : > { %1388 = vst [vmem:[%s2759_s28 + $0x120] sm:$0xff] %v1340_v57  ;;  %v1297_v22 = vpop.permute.xlu0 %1296 }
 0x1e0   : > { %1389 = vst.msk [vmem:[%s2759_s28 + $0x128] sm:$0xff] %vm271_vm0, %v1341_v31  ;;  %v1348_v11 = vadd.f32 %v1297_v22, %v1180_v1  ;;  %v1349_v14 = vadd.f32 %v1297_v22, %v1181_v35 }
 0x1e2   : > { %1396 = vst [vmem:[%s2759_s28 + $0x160] sm:$0xff] %v1348_v11 }
 0x1e3   : > { %1397 = vst.msk [vmem:[%s2759_s28 + $0x168] sm:$0xff] %vm271_vm0, %v1349_v14 }
 0x1e4   : > { %v1292_v15 = vpop.permute.xlu1 %1291 }
 0x1e5   : > { %v1346_v47 = vadd.f32 %v1292_v15, %v1178_v23  ;;  %v1347_v4 = vadd.f32 %v1292_v15, %v1179_v54 }
 0x1e7   : > { %1394 = vst [vmem:[%s2759_s28 + $0x150] sm:$0xff] %v1346_v47 }
 0x1e8   : > { %1395 = vst.msk [vmem:[%s2759_s28 + $0x158] sm:$0xff] %vm271_vm0, %v1347_v4 }
 0x1e9 PF: > { %s13_s12 = sadd.s32 1, %s1611_s12  }
 0x1ea   : > { %p10_p4 = scmp.ge.s32.totalorder %s13_s12, 4  }
 0x1ec   :  { %12 = sbr.rel (!%p10_p4) target bundleno = 1 (0x1), region = 68 }

</bundles_post_ra>
